<compile_context>
chip_gen: v7x
topology: tpu7x:2x2x1
jax: 0.10.0
libtpu: 0.0.40
codegen_flags: <defaults>
</compile_context>

<pallas_src>
import functools

import jax
import jax.numpy as jnp
from jax.experimental import pallas as pl
from jax.experimental.pallas import tpu as pltpu


def _round_up(n, m):
    return ((n + m - 1) // m) * m


# -----------------------------------------------------------------------------
# Kernel
# -----------------------------------------------------------------------------
def encoder_layer_kernel(
    x_ref,                              # (TM, Lp)  bf16
    w_fuse_ref, b_fuse_ref,             # (Lp, Dp), (1, Dp)  folded lg/cm/ce -> All_Fusion
    w_x2_ref, b_x2_ref,                 # (Lp, Dp), (1, Dp)  2*(W_emb @ Wf2a), folded bias
    w_f2_ref,                           # (Dp, Dp)           2*Wf2b
    g1_ref, be1_ref, g2_ref, be2_ref,   # LayerNorm params   (1, Dp)
    wc1_ref, bc1_ref,                   # conv1 (k=1)        (Dp, Fp), (1, Fp)
    wc2_ref, bc2_ref,                   # conv2 (k=1)        (Fp, Dp), (1, Dp)
    w_rec_ref, b_rec_ref,               # Linear_recover_seq_len (Dp, Lp), (1, Lp)
    o_ref,                              # (TM, Lp)
    *, d_model: int, d_pad: int, eps: float = 1e-5,
):
    f32 = jnp.float32
    mm_dtype = w_fuse_ref.dtype         # bf16 (or f32) matmul-operand dtype
    relu = lambda v: jnp.maximum(v, 0.0)

    def mm(a, w):
        return jnp.dot(a.astype(mm_dtype), w, preferred_element_type=f32)

    # Column mask / divisor so LayerNorm over the padded d_model axis matches
    # LayerNorm over the true d_model columns (padded columns are zero).
    col = jax.lax.broadcasted_iota(jnp.int32, (1, d_pad), 1)
    dmask = col < d_model
    inv_d = f32(1.0 / d_model)

    def layernorm(v, g, b):
        vm = jnp.where(dmask, v, 0.0)
        mu = jnp.sum(vm, axis=-1, keepdims=True) * inv_d
        diff = jnp.where(dmask, v - mu, 0.0)
        var = jnp.sum(diff * diff, axis=-1, keepdims=True) * inv_d
        return diff * jax.lax.rsqrt(var + eps) * g + b

    x = x_ref[...]                                              # (TM, Lp) bf16

    # fused = relu(Linear_All_Fusion(cat([lg(x), cm(x), ce(x)]))), folded to one matmul.
    fused = relu(mm(x, w_fuse_ref[...]) + b_fuse_ref[...]).astype(mm_dtype)

    # xr = 2 * Linear_All_Fusion_2(cat([Linear_embedding(x), fused]))
    #   (embedding + eval-mode dropout doubling folded into the weights).
    xr = mm(x, w_x2_ref[...]) + mm(fused, w_f2_ref[...]) + b_x2_ref[...]    # f32

    # y = conv2(relu(conv1(norm1(xr)))); k=1 convs == matmuls; dropout = identity.
    y = layernorm(xr, g1_ref[...], be1_ref[...])
    y = relu(mm(y, wc1_ref[...]) + bc1_ref[...]).astype(mm_dtype)
    y = mm(y, wc2_ref[...]) + bc2_ref[...]

    # out = Linear_recover_seq_len(norm2(xr + y))
    z = layernorm(xr + y, g2_ref[...], be2_ref[...])
    o_ref[...] = (mm(z, w_rec_ref[...]) + b_rec_ref[...]).astype(o_ref.dtype)


# -----------------------------------------------------------------------------
# Parameter packing (wrapper-side): fold the linear-only chains in f32, pad to
# lane-dense widths, cast matmul weights to bf16 ONCE.  Biases / LN params stay f32.
# -----------------------------------------------------------------------------
def pack_params(params, *, seq_len, d_model, d_ff, matmul_dtype=jnp.bfloat16):
    lane = 128
    Lp = _round_up(seq_len, lane)
    Dp = _round_up(d_model, lane)
    Fp = _round_up(d_ff, lane)

    # --- algebraic folds (composed in f32) ---------------------------------------
    w_fuse = (params["w_lg"] @ params["wf3a"] + params["w_cm"] @ params["wf3b"]
              + params["w_ce"] @ params["wf3c"])
    b_fuse = (params["b_lg"] @ params["wf3a"] + params["b_cm"] @ params["wf3b"]
              + params["b_ce"] @ params["wf3c"] + params["bf3"])
    # Embedding folded into All_Fusion_2's first half; eval-mode
    # `x_d + dropout(x_d) == 2*x_d` folded as an exact power-of-2 scale.
    w_x2 = 2.0 * (params["w_emb"] @ params["wf2a"])
    b_x2 = 2.0 * (params["b_emb"] @ params["wf2a"] + params["bf2"])
    w_f2 = 2.0 * params["wf2b"]

    def pad2(a, r, c):
        return jnp.pad(a, ((0, r - a.shape[0]), (0, c - a.shape[1])))

    packed = dict(
        w_fuse=pad2(w_fuse, Lp, Dp).astype(matmul_dtype), b_fuse=pad2(b_fuse, 1, Dp),
        w_x2=pad2(w_x2, Lp, Dp).astype(matmul_dtype),     b_x2=pad2(b_x2, 1, Dp),
        w_f2=pad2(w_f2, Dp, Dp).astype(matmul_dtype),
        g1=pad2(params["g1"], 1, Dp), be1=pad2(params["be1"], 1, Dp),
        g2=pad2(params["g2"], 1, Dp), be2=pad2(params["be2"], 1, Dp),
        wc1=pad2(params["wc1"], Dp, Fp).astype(matmul_dtype), bc1=pad2(params["bc1"], 1, Fp),
        wc2=pad2(params["wc2"], Fp, Dp).astype(matmul_dtype), bc2=pad2(params["bc2"], 1, Dp),
        w_rec=pad2(params["w_rec"], Dp, Lp).astype(matmul_dtype),
        b_rec=pad2(params["b_rec"], 1, Lp),
    )
    return packed, dict(Lp=Lp, Dp=Dp, Fp=Fp)


# -----------------------------------------------------------------------------
# Generation-aware VMEM limit / row-tile derivation
# -----------------------------------------------------------------------------
def _vmem_limit_bytes():
    """~80% of physical VMEM (v5e/v6e: 128 MiB -> ~102 MiB, v7x: 64 MiB -> ~51 MiB)."""
    try:
        cap = int(pltpu.get_tpu_info().vmem_capacity_bytes)
        if cap <= 0:
            raise ValueError
    except Exception:
        cap = 64 * 1024 * 1024          # conservative default (v7x-sized)
    return min(int(cap * 0.8), 112 * 1024 * 1024)


def _derive_row_tile(Lp, Dp, Fp, weight_bytes, vmem_limit):
    """Largest row tile (multiple of 8, capped at 512) whose x/out buffers and
    f32/bf16 temporaries fit comfortably alongside the resident weights."""
    per_row = (2 * Lp * 2            # bf16 x tile, double-buffered
               + 2 * Lp * 4          # f32 out tile, double-buffered
               + 4 * (3 * Dp + Fp)   # f32 temporaries: xr, LN outs, conv1 out, slack
               + 2 * (Dp + Fp))      # bf16 matmul-operand copies
    budget = int(vmem_limit * 0.7) - weight_bytes
    tm = budget // max(per_row, 1)
    return max(8, min(512, (tm // 8) * 8))


# -----------------------------------------------------------------------------
# Wrapper
# -----------------------------------------------------------------------------
def encoder_layer_forward(x, params, *, row_tile=None, matmul_dtype=jnp.bfloat16,
                          out_dtype=jnp.float32):
    """x: [B, N, L]  ->  [B, N, L]  (eval-mode EncoderLayer forward, main path)."""
    B, N, L = x.shape
    M = B * N
    d_model, d_ff = params["wc1"].shape

    packed, dims = pack_params(params, seq_len=L, d_model=d_model, d_ff=d_ff,
                               matmul_dtype=matmul_dtype)
    Lp, Dp, Fp = dims["Lp"], dims["Dp"], dims["Fp"]

    weight_order = ("w_fuse", "b_fuse", "w_x2", "b_x2", "w_f2",
                    "g1", "be1", "g2", "be2",
                    "wc1", "bc1", "wc2", "bc2", "w_rec", "b_rec")
    weight_args = [packed[k] for k in weight_order]
    weight_bytes = sum(int(w.size) * w.dtype.itemsize for w in weight_args)

    vmem_limit = _vmem_limit_bytes()
    if row_tile is None:
        row_tile = _derive_row_tile(Lp, Dp, Fp, weight_bytes, vmem_limit)
    row_tile = max(8, (row_tile // 8) * 8)
    row_tile = min(row_tile, _round_up(M, 8))       # don't pad rows beyond need
    Mp = _round_up(max(M, row_tile), row_tile)

    # x is only ever a matmul operand -> ship it to the kernel already in bf16.
    x_pad = jnp.pad(x.reshape(M, L), ((0, Mp - M), (0, Lp - L))).astype(matmul_dtype)

    # Folded FLOP count: x@W_fuse + x@W_x2 + fused@W_f2 + conv1 + conv2 + recover.
    flops = 2 * Mp * (3 * Lp * Dp + Dp * Dp + 2 * Dp * Fp)
    bytes_accessed = (x_pad.size * x_pad.dtype.itemsize
                      + Mp * Lp * jnp.dtype(out_dtype).itemsize
                      + weight_bytes)
    cost = pl.CostEstimate(flops=int(flops), transcendentals=2 * Mp,
                           bytes_accessed=int(bytes_accessed))

    kernel = functools.partial(encoder_layer_kernel, d_model=d_model, d_pad=Dp)
    grid = (Mp // row_tile,)

    def run(weight_pipeline_mode):
        def wspec(arr):
            nd = arr.ndim
            idx = lambda i: (0,) * nd          # constant index map: weight stays resident
            if weight_pipeline_mode is None:
                return pl.BlockSpec(arr.shape, idx)
            return pl.BlockSpec(arr.shape, idx, pipeline_mode=weight_pipeline_mode)

        in_specs = [pl.BlockSpec((row_tile, Lp), lambda i: (i, 0))]
        in_specs += [wspec(w) for w in weight_args]
        out_spec = pl.BlockSpec((row_tile, Lp), lambda i: (i, 0))

        return pl.pallas_call(
            kernel,
            out_shape=jax.ShapeDtypeStruct((Mp, Lp), out_dtype),
            grid_spec=pltpu.PrefetchScalarGridSpec(
                num_scalar_prefetch=0,
                grid=grid,
                in_specs=in_specs,
                out_specs=out_spec,
            ),
            compiler_params=pltpu.CompilerParams(
                dimension_semantics=("parallel",),
                vmem_limit_bytes=vmem_limit,
            ),
            cost_estimate=cost,
        )(x_pad, *weight_args)

    try:
        # Constant-index weights: single-buffer them (halves their VMEM footprint).
        out = run(pl.Buffered(1))
    except Exception:
        # TODO(synk): pl.Buffered(1) single-buffering did not lower on this
        # jax/libtpu combination; fall back to default double-buffered weights.
        out = run(None)

    return out[:M, :L].reshape(B, N, L)


# -----------------------------------------------------------------------------
# Deterministic synthetic parameters (weights stored transposed as [in, out],
# biases as [1, out]) and pure-JAX references of the eval-mode forward.
# -----------------------------------------------------------------------------
def make_params(key, seq_len, d_model, d_ff):
    keys = jax.random.split(key, 16)
    s = 0.05

    def lin(k, n_in, n_out):
        kw, kb = jax.random.split(k)
        w = jax.random.normal(kw, (n_in, n_out), jnp.float32) * s
        b = jax.random.normal(kb, (1, n_out), jnp.float32) * s
        return w, b

    w_lg, b_lg = lin(keys[0], seq_len, d_model)
    w_cm, b_cm = lin(keys[1], seq_len, d_model)
    w_ce, b_ce = lin(keys[2], seq_len, d_model)
    w_emb, b_emb = lin(keys[3], seq_len, d_model)

    wf3, bf3 = lin(keys[4], 3 * d_model, d_model)
    wf3a, wf3b, wf3c = wf3[:d_model], wf3[d_model:2 * d_model], wf3[2 * d_model:]

    wf2, bf2 = lin(keys[5], 2 * d_model, d_model)
    wf2a, wf2b = wf2[:d_model], wf2[d_model:]

    g1 = 1.0 + 0.01 * jax.random.normal(keys[6], (1, d_model), jnp.float32)
    be1 = 0.01 * jax.random.normal(keys[7], (1, d_model), jnp.float32)
    g2 = 1.0 + 0.01 * jax.random.normal(keys[8], (1, d_model), jnp.float32)
    be2 = 0.01 * jax.random.normal(keys[9], (1, d_model), jnp.float32)

    wc1, bc1 = lin(keys[10], d_model, d_ff)
    wc2, bc2 = lin(keys[11], d_ff, d_model)
    w_rec, b_rec = lin(keys[12], d_model, seq_len)

    return dict(
        w_lg=w_lg, b_lg=b_lg, w_cm=w_cm, b_cm=b_cm, w_ce=w_ce, b_ce=b_ce,
        w_emb=w_emb, b_emb=b_emb,
        wf3a=wf3a, wf3b=wf3b, wf3c=wf3c, bf3=bf3,
        wf2a=wf2a, wf2b=wf2b, bf2=bf2,
        g1=g1, be1=be1, g2=g2, be2=be2,
        wc1=wc1, bc1=bc1, wc2=wc2, bc2=bc2,
        w_rec=w_rec, b_rec=b_rec,
    )


def reference_forward(x, p, *, matmul_dtype=jnp.float32, eps=1e-5):
    """Pure-JAX reference mirroring the PyTorch forward (eval mode, unfolded)."""
    def mm(a, w):
        return jnp.dot(a.astype(matmul_dtype), w.astype(matmul_dtype),
                       preferred_element_type=jnp.float32)

    def ln(v, g, b):
        mu = jnp.mean(v, axis=-1, keepdims=True)
        var = jnp.mean((v - mu) ** 2, axis=-1, keepdims=True)
        return (v - mu) * jax.lax.rsqrt(var + eps) * g + b

    relu = lambda v: jnp.maximum(v, 0.0)
    xl = mm(x, p["w_lg"]) + p["b_lg"]
    xm = mm(x, p["w_cm"]) + p["b_cm"]
    xe = mm(x, p["w_ce"]) + p["b_ce"]
    cat3 = jnp.concatenate([xl, xm, xe], axis=-1)
    wf3 = jnp.concatenate([p["wf3a"], p["wf3b"], p["wf3c"]], axis=0)
    fused = relu(mm(cat3, wf3) + p["bf3"])
    emb = mm(x, p["w_emb"]) + p["b_emb"]
    cat2 = jnp.concatenate([emb, fused], axis=-1)
    wf2 = jnp.concatenate([p["wf2a"], p["wf2b"]], axis=0)
    x_d = mm(cat2, wf2) + p["bf2"]
    xr = x_d + x_d                       # dropout identity in eval
    y = ln(xr, p["g1"], p["be1"])
    y = relu(mm(y, p["wc1"]) + p["bc1"])
    y = mm(y, p["wc2"]) + p["bc2"]
    z = ln(xr + y, p["g2"], p["be2"])
    return mm(z, p["w_rec"]) + p["b_rec"]


def reference_forward_folded(x, p, *, matmul_dtype=jnp.bfloat16, eps=1e-5):
    """Reference that mirrors the kernel's folded weights + bf16 matmul operands."""
    def mm(a, w):
        return jnp.dot(a.astype(matmul_dtype), w.astype(matmul_dtype),
                       preferred_element_type=jnp.float32)

    def ln(v, g, b):
        mu = jnp.mean(v, axis=-1, keepdims=True)
        var = jnp.mean((v - mu) ** 2, axis=-1, keepdims=True)
        return (v - mu) * jax.lax.rsqrt(var + eps) * g + b

    relu = lambda v: jnp.maximum(v, 0.0)
    w_fuse = p["w_lg"] @ p["wf3a"] + p["w_cm"] @ p["wf3b"] + p["w_ce"] @ p["wf3c"]
    b_fuse = p["b_lg"] @ p["wf3a"] + p["b_cm"] @ p["wf3b"] + p["b_ce"] @ p["wf3c"] + p["bf3"]
    w_x2 = 2.0 * (p["w_emb"] @ p["wf2a"])
    b_x2 = 2.0 * (p["b_emb"] @ p["wf2a"] + p["bf2"])
    w_f2 = 2.0 * p["wf2b"]

    fused = relu(mm(x, w_fuse) + b_fuse)
    xr = mm(x, w_x2) + mm(fused, w_f2) + b_x2
    y = ln(xr, p["g1"], p["be1"])
    y = relu(mm(y, p["wc1"]) + p["bc1"])
    y = mm(y, p["wc2"]) + p["bc2"]
    z = ln(xr + y, p["g2"], p["be2"])
    return mm(z, p["w_rec"]) + p["b_rec"]


if __name__ == "__main__":
    # small config: batch=2, channels(N)=8, seq_len=16, d_model=32, d_ff=64
    B, N, seq_len, d_model, d_ff = 2, 8, 16, 32, 64

    key = jax.random.PRNGKey(0)
    kx, kp = jax.random.split(key)
    x = jax.random.normal(kx, (B, N, seq_len), jnp.float32)
    params = make_params(kp, seq_len, d_model, d_ff)

    # Default (derived) row tile: it is automatically clamped to the real row
    # count here (M=16), so no artificial tiny-tile tuning is carried over.
    out = encoder_layer_forward(x, params, matmul_dtype=jnp.bfloat16)
    out = jax.block_until_ready(out)
    assert out.shape == (B, N, seq_len), out.shape

    # Tight check vs a JAX reference using the same folded weights / bf16 operands.
    ref_folded = reference_forward_folded(x, params, matmul_dtype=jnp.bfloat16)
    err_b = float(jnp.max(jnp.abs(out - ref_folded)))
    assert jnp.allclose(out, ref_folded, atol=2e-3, rtol=2e-3), err_b

    # Loose sanity check vs the pure-f32 unfolded reference (true eval semantics).
    ref_f32 = reference_forward(x, params, matmul_dtype=jnp.float32)
    err_f = float(jnp.max(jnp.abs(out - ref_f32)))
    assert jnp.allclose(out, ref_f32, atol=5e-2, rtol=5e-2), err_f

    print("KERNEL_OK")
</pallas_src>

<mosaic_0001>
module attributes {stable_mosaic.version = 11 : i64} {
  func.func @encoder_layer_kernel(%arg0: i32, %arg1: memref<16x128xbf16, #tpu.memory_space<vmem>>, %arg2: memref<128x128xbf16, #tpu.memory_space<vmem>>, %arg3: memref<1x128xf32, #tpu.memory_space<vmem>>, %arg4: memref<128x128xbf16, #tpu.memory_space<vmem>>, %arg5: memref<1x128xf32, #tpu.memory_space<vmem>>, %arg6: memref<128x128xbf16, #tpu.memory_space<vmem>>, %arg7: memref<1x128xf32, #tpu.memory_space<vmem>>, %arg8: memref<1x128xf32, #tpu.memory_space<vmem>>, %arg9: memref<1x128xf32, #tpu.memory_space<vmem>>, %arg10: memref<1x128xf32, #tpu.memory_space<vmem>>, %arg11: memref<128x128xbf16, #tpu.memory_space<vmem>>, %arg12: memref<1x128xf32, #tpu.memory_space<vmem>>, %arg13: memref<128x128xbf16, #tpu.memory_space<vmem>>, %arg14: memref<1x128xf32, #tpu.memory_space<vmem>>, %arg15: memref<128x128xbf16, #tpu.memory_space<vmem>>, %arg16: memref<1x128xf32, #tpu.memory_space<vmem>>, %arg17: memref<16x128xf32, #tpu.memory_space<vmem>>) attributes {dimension_semantics = [#tpu.dimension_semantics<parallel>], iteration_bounds = array<i64: 1>, scalar_prefetch = 0 : i64, scratch_operands = 0 : i64, tpu.core_type = #tpu.core_type<tc>, window_params = [{transform_indices = @transform_0, window_bounds = array<i64: 16, 128>}, {pipeline_mode = #tpu.pipeline_mode<synchronous>, transform_indices = @transform_1, window_bounds = array<i64: 128, 128>}, {pipeline_mode = #tpu.pipeline_mode<synchronous>, transform_indices = @transform_2, window_bounds = array<i64: 1, 128>}, {pipeline_mode = #tpu.pipeline_mode<synchronous>, transform_indices = @transform_3, window_bounds = array<i64: 128, 128>}, {pipeline_mode = #tpu.pipeline_mode<synchronous>, transform_indices = @transform_4, window_bounds = array<i64: 1, 128>}, {pipeline_mode = #tpu.pipeline_mode<synchronous>, transform_indices = @transform_5, window_bounds = array<i64: 128, 128>}, {pipeline_mode = #tpu.pipeline_mode<synchronous>, transform_indices = @transform_6, window_bounds = array<i64: 1, 128>}, {pipeline_mode = #tpu.pipeline_mode<synchronous>, transform_indices = @transform_7, window_bounds = array<i64: 1, 128>}, {pipeline_mode = #tpu.pipeline_mode<synchronous>, transform_indices = @transform_8, window_bounds = array<i64: 1, 128>}, {pipeline_mode = #tpu.pipeline_mode<synchronous>, transform_indices = @transform_9, window_bounds = array<i64: 1, 128>}, {pipeline_mode = #tpu.pipeline_mode<synchronous>, transform_indices = @transform_10, window_bounds = array<i64: 128, 128>}, {pipeline_mode = #tpu.pipeline_mode<synchronous>, transform_indices = @transform_11, window_bounds = array<i64: 1, 128>}, {pipeline_mode = #tpu.pipeline_mode<synchronous>, transform_indices = @transform_12, window_bounds = array<i64: 128, 128>}, {pipeline_mode = #tpu.pipeline_mode<synchronous>, transform_indices = @transform_13, window_bounds = array<i64: 1, 128>}, {pipeline_mode = #tpu.pipeline_mode<synchronous>, transform_indices = @transform_14, window_bounds = array<i64: 128, 128>}, {pipeline_mode = #tpu.pipeline_mode<synchronous>, transform_indices = @transform_15, window_bounds = array<i64: 1, 128>}, {transform_indices = @transform_16, window_bounds = array<i64: 16, 128>}]} {
    %0 = tpu.iota {dimensions = array<i32: 1>} : vector<1x128xi32>
    %c32_i32 = arith.constant 32 : i32
    %1 = vector.broadcast %c32_i32 : i32 to vector<1x128xi32>
    %2 = arith.cmpi slt, %0, %1 : vector<1x128xi32>
    %c0 = arith.constant 0 : index
    %c0_0 = arith.constant 0 : index
    %3 = vector.load %arg1[%c0, %c0_0] : memref<16x128xbf16, #tpu.memory_space<vmem>>, vector<16x128xbf16>
    %c0_1 = arith.constant 0 : index
    %c0_2 = arith.constant 0 : index
    %4 = vector.load %arg2[%c0_1, %c0_2] : memref<128x128xbf16, #tpu.memory_space<vmem>>, vector<128x128xbf16>
    %cst = arith.constant dense<0.000000e+00> : vector<16x128xf32>
    %5 = tpu.matmul %3, %4, %cst {dimension_numbers = #tpu.dot_dimension_numbers<[1], [0], [0], [1], [0, 0, 1, 1], [], []>} : vector<16x128xbf16>, vector<128x128xbf16>, vector<16x128xf32> -> vector<16x128xf32>
    %c0_3 = arith.constant 0 : index
    %c0_4 = arith.constant 0 : index
    %6 = vector.load %arg3[%c0_3, %c0_4] : memref<1x128xf32, #tpu.memory_space<vmem>>, vector<1x128xf32>
    %7 = vector.broadcast %6 : vector<1x128xf32> to vector<16x128xf32>
    %8 = arith.addf %5, %7 : vector<16x128xf32>
    %cst_5 = arith.constant 0.000000e+00 : f32
    %9 = vector.broadcast %cst_5 : f32 to vector<16x128xf32>
    %10 = arith.maximumf %8, %9 : vector<16x128xf32>
    %11 = arith.truncf %10 : vector<16x128xf32> to vector<16x128xbf16>
    %c0_6 = arith.constant 0 : index
    %c0_7 = arith.constant 0 : index
    %12 = vector.load %arg4[%c0_6, %c0_7] : memref<128x128xbf16, #tpu.memory_space<vmem>>, vector<128x128xbf16>
    %cst_8 = arith.constant dense<0.000000e+00> : vector<16x128xf32>
    %13 = tpu.matmul %3, %12, %cst_8 {dimension_numbers = #tpu.dot_dimension_numbers<[1], [0], [0], [1], [0, 0, 1, 1], [], []>} : vector<16x128xbf16>, vector<128x128xbf16>, vector<16x128xf32> -> vector<16x128xf32>
    %c0_9 = arith.constant 0 : index
    %c0_10 = arith.constant 0 : index
    %14 = vector.load %arg6[%c0_9, %c0_10] : memref<128x128xbf16, #tpu.memory_space<vmem>>, vector<128x128xbf16>
    %cst_11 = arith.constant dense<0.000000e+00> : vector<16x128xf32>
    %15 = tpu.matmul %11, %14, %cst_11 {dimension_numbers = #tpu.dot_dimension_numbers<[1], [0], [0], [1], [0, 0, 1, 1], [], []>} : vector<16x128xbf16>, vector<128x128xbf16>, vector<16x128xf32> -> vector<16x128xf32>
    %16 = arith.addf %13, %15 : vector<16x128xf32>
    %c0_12 = arith.constant 0 : index
    %c0_13 = arith.constant 0 : index
    %17 = vector.load %arg5[%c0_12, %c0_13] : memref<1x128xf32, #tpu.memory_space<vmem>>, vector<1x128xf32>
    %18 = vector.broadcast %17 : vector<1x128xf32> to vector<16x128xf32>
    %19 = arith.addf %16, %18 : vector<16x128xf32>
    %c0_14 = arith.constant 0 : index
    %c0_15 = arith.constant 0 : index
    %20 = vector.load %arg7[%c0_14, %c0_15] : memref<1x128xf32, #tpu.memory_space<vmem>>, vector<1x128xf32>
    %c0_16 = arith.constant 0 : index
    %c0_17 = arith.constant 0 : index
    %21 = vector.load %arg8[%c0_16, %c0_17] : memref<1x128xf32, #tpu.memory_space<vmem>>, vector<1x128xf32>
    %cst_18 = arith.constant 0.000000e+00 : f32
    %22 = vector.shape_cast %2 : vector<1x128xi1> to vector<1x128xi1>
    %23 = vector.broadcast %22 : vector<1x128xi1> to vector<16x128xi1>
    %24 = vector.broadcast %cst_18 : f32 to vector<16x128xf32>
    %25 = arith.select %23, %19, %24 : vector<16x128xi1>, vector<16x128xf32>
    %cst_19 = arith.constant dense<0.000000e+00> : vector<16xf32>
    %26 = vector.multi_reduction <add>, %25, %cst_19 [1] : vector<16x128xf32> to vector<16xf32>
    %27 = vector.shape_cast %26 : vector<16xf32> to vector<16x1xf32>
    %cst_20 = arith.constant 3.125000e-02 : f32
    %28 = vector.broadcast %cst_20 : f32 to vector<16x1xf32>
    %29 = arith.mulf %27, %28 : vector<16x1xf32>
    %30 = vector.broadcast %29 : vector<16x1xf32> to vector<16x128xf32>
    %31 = arith.subf %19, %30 : vector<16x128xf32>
    %cst_21 = arith.constant 0.000000e+00 : f32
    %32 = vector.shape_cast %2 : vector<1x128xi1> to vector<1x128xi1>
    %33 = vector.broadcast %32 : vector<1x128xi1> to vector<16x128xi1>
    %34 = vector.broadcast %cst_21 : f32 to vector<16x128xf32>
    %35 = arith.select %33, %31, %34 : vector<16x128xi1>, vector<16x128xf32>
    %36 = arith.mulf %35, %35 : vector<16x128xf32>
    %cst_22 = arith.constant dense<0.000000e+00> : vector<16xf32>
    %37 = vector.multi_reduction <add>, %36, %cst_22 [1] : vector<16x128xf32> to vector<16xf32>
    %38 = vector.shape_cast %37 : vector<16xf32> to vector<16x1xf32>
    %cst_23 = arith.constant 3.125000e-02 : f32
    %39 = vector.broadcast %cst_23 : f32 to vector<16x1xf32>
    %40 = arith.mulf %38, %39 : vector<16x1xf32>
    %cst_24 = arith.constant 9.99999974E-6 : f32
    %41 = vector.broadcast %cst_24 : f32 to vector<16x1xf32>
    %42 = arith.addf %40, %41 : vector<16x1xf32>
    %43 = math.rsqrt %42 : vector<16x1xf32>
    %44 = vector.broadcast %43 : vector<16x1xf32> to vector<16x128xf32>
    %45 = arith.mulf %35, %44 : vector<16x128xf32>
    %46 = vector.broadcast %20 : vector<1x128xf32> to vector<16x128xf32>
    %47 = arith.mulf %45, %46 : vector<16x128xf32>
    %48 = vector.broadcast %21 : vector<1x128xf32> to vector<16x128xf32>
    %49 = arith.addf %47, %48 : vector<16x128xf32>
    %c0_25 = arith.constant 0 : index
    %c0_26 = arith.constant 0 : index
    %50 = vector.load %arg11[%c0_25, %c0_26] : memref<128x128xbf16, #tpu.memory_space<vmem>>, vector<128x128xbf16>
    %51 = arith.truncf %49 : vector<16x128xf32> to vector<16x128xbf16>
    %cst_27 = arith.constant dense<0.000000e+00> : vector<16x128xf32>
    %52 = tpu.matmul %51, %50, %cst_27 {dimension_numbers = #tpu.dot_dimension_numbers<[1], [0], [0], [1], [0, 0, 1, 1], [], []>} : vector<16x128xbf16>, vector<128x128xbf16>, vector<16x128xf32> -> vector<16x128xf32>
    %c0_28 = arith.constant 0 : index
    %c0_29 = arith.constant 0 : index
    %53 = vector.load %arg12[%c0_28, %c0_29] : memref<1x128xf32, #tpu.memory_space<vmem>>, vector<1x128xf32>
    %54 = vector.broadcast %53 : vector<1x128xf32> to vector<16x128xf32>
    %55 = arith.addf %52, %54 : vector<16x128xf32>
    %cst_30 = arith.constant 0.000000e+00 : f32
    %56 = vector.broadcast %cst_30 : f32 to vector<16x128xf32>
    %57 = arith.maximumf %55, %56 : vector<16x128xf32>
    %58 = arith.truncf %57 : vector<16x128xf32> to vector<16x128xbf16>
    %c0_31 = arith.constant 0 : index
    %c0_32 = arith.constant 0 : index
    %59 = vector.load %arg13[%c0_31, %c0_32] : memref<128x128xbf16, #tpu.memory_space<vmem>>, vector<128x128xbf16>
    %cst_33 = arith.constant dense<0.000000e+00> : vector<16x128xf32>
    %60 = tpu.matmul %58, %59, %cst_33 {dimension_numbers = #tpu.dot_dimension_numbers<[1], [0], [0], [1], [0, 0, 1, 1], [], []>} : vector<16x128xbf16>, vector<128x128xbf16>, vector<16x128xf32> -> vector<16x128xf32>
    %c0_34 = arith.constant 0 : index
    %c0_35 = arith.constant 0 : index
    %61 = vector.load %arg14[%c0_34, %c0_35] : memref<1x128xf32, #tpu.memory_space<vmem>>, vector<1x128xf32>
    %62 = vector.broadcast %61 : vector<1x128xf32> to vector<16x128xf32>
    %63 = arith.addf %60, %62 : vector<16x128xf32>
    %64 = arith.addf %19, %63 : vector<16x128xf32>
    %c0_36 = arith.constant 0 : index
    %c0_37 = arith.constant 0 : index
    %65 = vector.load %arg9[%c0_36, %c0_37] : memref<1x128xf32, #tpu.memory_space<vmem>>, vector<1x128xf32>
    %c0_38 = arith.constant 0 : index
    %c0_39 = arith.constant 0 : index
    %66 = vector.load %arg10[%c0_38, %c0_39] : memref<1x128xf32, #tpu.memory_space<vmem>>, vector<1x128xf32>
    %cst_40 = arith.constant 0.000000e+00 : f32
    %67 = vector.shape_cast %2 : vector<1x128xi1> to vector<1x128xi1>
    %68 = vector.broadcast %67 : vector<1x128xi1> to vector<16x128xi1>
    %69 = vector.broadcast %cst_40 : f32 to vector<16x128xf32>
    %70 = arith.select %68, %64, %69 : vector<16x128xi1>, vector<16x128xf32>
    %cst_41 = arith.constant dense<0.000000e+00> : vector<16xf32>
    %71 = vector.multi_reduction <add>, %70, %cst_41 [1] : vector<16x128xf32> to vector<16xf32>
    %72 = vector.shape_cast %71 : vector<16xf32> to vector<16x1xf32>
    %cst_42 = arith.constant 3.125000e-02 : f32
    %73 = vector.broadcast %cst_42 : f32 to vector<16x1xf32>
    %74 = arith.mulf %72, %73 : vector<16x1xf32>
    %75 = vector.broadcast %74 : vector<16x1xf32> to vector<16x128xf32>
    %76 = arith.subf %64, %75 : vector<16x128xf32>
    %cst_43 = arith.constant 0.000000e+00 : f32
    %77 = vector.shape_cast %2 : vector<1x128xi1> to vector<1x128xi1>
    %78 = vector.broadcast %77 : vector<1x128xi1> to vector<16x128xi1>
    %79 = vector.broadcast %cst_43 : f32 to vector<16x128xf32>
    %80 = arith.select %78, %76, %79 : vector<16x128xi1>, vector<16x128xf32>
    %81 = arith.mulf %80, %80 : vector<16x128xf32>
    %cst_44 = arith.constant dense<0.000000e+00> : vector<16xf32>
    %82 = vector.multi_reduction <add>, %81, %cst_44 [1] : vector<16x128xf32> to vector<16xf32>
    %83 = vector.shape_cast %82 : vector<16xf32> to vector<16x1xf32>
    %cst_45 = arith.constant 3.125000e-02 : f32
    %84 = vector.broadcast %cst_45 : f32 to vector<16x1xf32>
    %85 = arith.mulf %83, %84 : vector<16x1xf32>
    %cst_46 = arith.constant 9.99999974E-6 : f32
    %86 = vector.broadcast %cst_46 : f32 to vector<16x1xf32>
    %87 = arith.addf %85, %86 : vector<16x1xf32>
    %88 = math.rsqrt %87 : vector<16x1xf32>
    %89 = vector.broadcast %88 : vector<16x1xf32> to vector<16x128xf32>
    %90 = arith.mulf %80, %89 : vector<16x128xf32>
    %91 = vector.broadcast %65 : vector<1x128xf32> to vector<16x128xf32>
    %92 = arith.mulf %90, %91 : vector<16x128xf32>
    %93 = vector.broadcast %66 : vector<1x128xf32> to vector<16x128xf32>
    %94 = arith.addf %92, %93 : vector<16x128xf32>
    %c0_47 = arith.constant 0 : index
    %c0_48 = arith.constant 0 : index
    %95 = vector.load %arg15[%c0_47, %c0_48] : memref<128x128xbf16, #tpu.memory_space<vmem>>, vector<128x128xbf16>
    %96 = arith.truncf %94 : vector<16x128xf32> to vector<16x128xbf16>
    %cst_49 = arith.constant dense<0.000000e+00> : vector<16x128xf32>
    %97 = tpu.matmul %96, %95, %cst_49 {dimension_numbers = #tpu.dot_dimension_numbers<[1], [0], [0], [1], [0, 0, 1, 1], [], []>} : vector<16x128xbf16>, vector<128x128xbf16>, vector<16x128xf32> -> vector<16x128xf32>
    %c0_50 = arith.constant 0 : index
    %c0_51 = arith.constant 0 : index
    %98 = vector.load %arg16[%c0_50, %c0_51] : memref<1x128xf32, #tpu.memory_space<vmem>>, vector<1x128xf32>
    %99 = vector.broadcast %98 : vector<1x128xf32> to vector<16x128xf32>
    %100 = arith.addf %97, %99 : vector<16x128xf32>
    %c0_52 = arith.constant 0 : index
    %c0_53 = arith.constant 0 : index
    %101 = vector.load %arg17[%c0_52, %c0_53] : memref<16x128xf32, #tpu.memory_space<vmem>>, vector<16x128xf32>
    tpu.vector_store %arg17[%c0_52, %c0_53], %100 {strides = array<i32>} : memref<16x128xf32, #tpu.memory_space<vmem>>, vector<16x128xf32>,
    return
  }
  func.func @transform_0(%arg0: i32) -> (i32, i32) {
    %c0_i32 = arith.constant 0 : i32
    %c0_i32_0 = arith.constant 0 : i32
    return %arg0, %c0_i32 : i32, i32
  }
  func.func @transform_1(%arg0: i32) -> (i32, i32) {
    %c0_i32 = arith.constant 0 : i32
    %c0_i32_0 = arith.constant 0 : i32
    %c0_i32_1 = arith.constant 0 : i32
    return %c0_i32, %c0_i32_0 : i32, i32
  }
  func.func @transform_2(%arg0: i32) -> (i32, i32) {
    %c0_i32 = arith.constant 0 : i32
    %c0_i32_0 = arith.constant 0 : i32
    %c0_i32_1 = arith.constant 0 : i32
    return %c0_i32, %c0_i32_0 : i32, i32
  }
  func.func @transform_3(%arg0: i32) -> (i32, i32) {
    %c0_i32 = arith.constant 0 : i32
    %c0_i32_0 = arith.constant 0 : i32
    %c0_i32_1 = arith.constant 0 : i32
    return %c0_i32, %c0_i32_0 : i32, i32
  }
  func.func @transform_4(%arg0: i32) -> (i32, i32) {
    %c0_i32 = arith.constant 0 : i32
    %c0_i32_0 = arith.constant 0 : i32
    %c0_i32_1 = arith.constant 0 : i32
    return %c0_i32, %c0_i32_0 : i32, i32
  }
  func.func @transform_5(%arg0: i32) -> (i32, i32) {
    %c0_i32 = arith.constant 0 : i32
    %c0_i32_0 = arith.constant 0 : i32
    %c0_i32_1 = arith.constant 0 : i32
    return %c0_i32, %c0_i32_0 : i32, i32
  }
  func.func @transform_6(%arg0: i32) -> (i32, i32) {
    %c0_i32 = arith.constant 0 : i32
    %c0_i32_0 = arith.constant 0 : i32
    %c0_i32_1 = arith.constant 0 : i32
    return %c0_i32, %c0_i32_0 : i32, i32
  }
  func.func @transform_7(%arg0: i32) -> (i32, i32) {
    %c0_i32 = arith.constant 0 : i32
    %c0_i32_0 = arith.constant 0 : i32
    %c0_i32_1 = arith.constant 0 : i32
    return %c0_i32, %c0_i32_0 : i32, i32
  }
  func.func @transform_8(%arg0: i32) -> (i32, i32) {
    %c0_i32 = arith.constant 0 : i32
    %c0_i32_0 = arith.constant 0 : i32
    %c0_i32_1 = arith.constant 0 : i32
    return %c0_i32, %c0_i32_0 : i32, i32
  }
  func.func @transform_9(%arg0: i32) -> (i32, i32) {
    %c0_i32 = arith.constant 0 : i32
    %c0_i32_0 = arith.constant 0 : i32
    %c0_i32_1 = arith.constant 0 : i32
    return %c0_i32, %c0_i32_0 : i32, i32
  }
  func.func @transform_10(%arg0: i32) -> (i32, i32) {
    %c0_i32 = arith.constant 0 : i32
    %c0_i32_0 = arith.constant 0 : i32
    %c0_i32_1 = arith.constant 0 : i32
    return %c0_i32, %c0_i32_0 : i32, i32
  }
  func.func @transform_11(%arg0: i32) -> (i32, i32) {
    %c0_i32 = arith.constant 0 : i32
    %c0_i32_0 = arith.constant 0 : i32
    %c0_i32_1 = arith.constant 0 : i32
    return %c0_i32, %c0_i32_0 : i32, i32
  }
  func.func @transform_12(%arg0: i32) -> (i32, i32) {
    %c0_i32 = arith.constant 0 : i32
    %c0_i32_0 = arith.constant 0 : i32
    %c0_i32_1 = arith.constant 0 : i32
    return %c0_i32, %c0_i32_0 : i32, i32
  }
  func.func @transform_13(%arg0: i32) -> (i32, i32) {
    %c0_i32 = arith.constant 0 : i32
    %c0_i32_0 = arith.constant 0 : i32
    %c0_i32_1 = arith.constant 0 : i32
    return %c0_i32, %c0_i32_0 : i32, i32
  }
  func.func @transform_14(%arg0: i32) -> (i32, i32) {
    %c0_i32 = arith.constant 0 : i32
    %c0_i32_0 = arith.constant 0 : i32
    %c0_i32_1 = arith.constant 0 : i32
    return %c0_i32, %c0_i32_0 : i32, i32
  }
  func.func @transform_15(%arg0: i32) -> (i32, i32) {
    %c0_i32 = arith.constant 0 : i32
    %c0_i32_0 = arith.constant 0 : i32
    %c0_i32_1 = arith.constant 0 : i32
    return %c0_i32, %c0_i32_0 : i32, i32
  }
  func.func @transform_16(%arg0: i32) -> (i32, i32) {
    %c0_i32 = arith.constant 0 : i32
    %c0_i32_0 = arith.constant 0 : i32
    return %arg0, %c0_i32 : i32, i32
  }
}

module attributes {stable_mosaic.version = 11 : i64} {
  func.func @encoder_layer_kernel(%arg0: i32, %arg1: memref<16x128xbf16, #tpu.memory_space<vmem>>, %arg2: memref<128x128xbf16, #tpu.memory_space<vmem>>, %arg3: memref<1x128xf32, #tpu.memory_space<vmem>>, %arg4: memref<128x128xbf16, #tpu.memory_space<vmem>>, %arg5: memref<1x128xf32, #tpu.memory_space<vmem>>, %arg6: memref<128x128xbf16, #tpu.memory_space<vmem>>, %arg7: memref<1x128xf32, #tpu.memory_space<vmem>>, %arg8: memref<1x128xf32, #tpu.memory_space<vmem>>, %arg9: memref<1x128xf32, #tpu.memory_space<vmem>>, %arg10: memref<1x128xf32, #tpu.memory_space<vmem>>, %arg11: memref<128x128xbf16, #tpu.memory_space<vmem>>, %arg12: memref<1x128xf32, #tpu.memory_space<vmem>>, %arg13: memref<128x128xbf16, #tpu.memory_space<vmem>>, %arg14: memref<1x128xf32, #tpu.memory_space<vmem>>, %arg15: memref<128x128xbf16, #tpu.memory_space<vmem>>, %arg16: memref<1x128xf32, #tpu.memory_space<vmem>>, %arg17: memref<16x128xf32, #tpu.memory_space<vmem>>) attributes {dimension_semantics = [#tpu.dimension_semantics<parallel>], iteration_bounds = array<i64: 1>, scalar_prefetch = 0 : i64, scratch_operands = 0 : i64, tpu.core_type = #tpu.core_type<tc>, window_params = [{transform_indices = @transform_0, window_bounds = array<i64: 16, 128>}, {pipeline_mode = #tpu.pipeline_mode<synchronous>, transform_indices = @transform_1, window_bounds = array<i64: 128, 128>}, {pipeline_mode = #tpu.pipeline_mode<synchronous>, transform_indices = @transform_2, window_bounds = array<i64: 1, 128>}, {pipeline_mode = #tpu.pipeline_mode<synchronous>, transform_indices = @transform_3, window_bounds = array<i64: 128, 128>}, {pipeline_mode = #tpu.pipeline_mode<synchronous>, transform_indices = @transform_4, window_bounds = array<i64: 1, 128>}, {pipeline_mode = #tpu.pipeline_mode<synchronous>, transform_indices = @transform_5, window_bounds = array<i64: 128, 128>}, {pipeline_mode = #tpu.pipeline_mode<synchronous>, transform_indices = @transform_6, window_bounds = array<i64: 1, 128>}, {pipeline_mode = #tpu.pipeline_mode<synchronous>, transform_indices = @transform_7, window_bounds = array<i64: 1, 128>}, {pipeline_mode = #tpu.pipeline_mode<synchronous>, transform_indices = @transform_8, window_bounds = array<i64: 1, 128>}, {pipeline_mode = #tpu.pipeline_mode<synchronous>, transform_indices = @transform_9, window_bounds = array<i64: 1, 128>}, {pipeline_mode = #tpu.pipeline_mode<synchronous>, transform_indices = @transform_10, window_bounds = array<i64: 128, 128>}, {pipeline_mode = #tpu.pipeline_mode<synchronous>, transform_indices = @transform_11, window_bounds = array<i64: 1, 128>}, {pipeline_mode = #tpu.pipeline_mode<synchronous>, transform_indices = @transform_12, window_bounds = array<i64: 128, 128>}, {pipeline_mode = #tpu.pipeline_mode<synchronous>, transform_indices = @transform_13, window_bounds = array<i64: 1, 128>}, {pipeline_mode = #tpu.pipeline_mode<synchronous>, transform_indices = @transform_14, window_bounds = array<i64: 128, 128>}, {pipeline_mode = #tpu.pipeline_mode<synchronous>, transform_indices = @transform_15, window_bounds = array<i64: 1, 128>}, {transform_indices = @transform_16, window_bounds = array<i64: 16, 128>}]} {
    %0 = tpu.iota {dimensions = array<i32: 1>} : vector<1x128xi32>
    %c32_i32 = arith.constant 32 : i32
    %1 = vector.broadcast %c32_i32 : i32 to vector<1x128xi32>
    %2 = arith.cmpi slt, %0, %1 : vector<1x128xi32>
    %c0 = arith.constant 0 : index
    %c0_0 = arith.constant 0 : index
    %3 = vector.load %arg1[%c0, %c0_0] : memref<16x128xbf16, #tpu.memory_space<vmem>>, vector<16x128xbf16>
    %c0_1 = arith.constant 0 : index
    %c0_2 = arith.constant 0 : index
    %4 = vector.load %arg2[%c0_1, %c0_2] : memref<128x128xbf16, #tpu.memory_space<vmem>>, vector<128x128xbf16>
    %cst = arith.constant dense<0.000000e+00> : vector<16x128xf32>
    %5 = tpu.matmul %3, %4, %cst {dimension_numbers = #tpu.dot_dimension_numbers<[1], [0], [0], [1], [0, 0, 1, 1], [], []>} : vector<16x128xbf16>, vector<128x128xbf16>, vector<16x128xf32> -> vector<16x128xf32>
    %c0_3 = arith.constant 0 : index
    %c0_4 = arith.constant 0 : index
    %6 = vector.load %arg3[%c0_3, %c0_4] : memref<1x128xf32, #tpu.memory_space<vmem>>, vector<1x128xf32>
    %7 = vector.broadcast %6 : vector<1x128xf32> to vector<16x128xf32>
    %8 = arith.addf %5, %7 : vector<16x128xf32>
    %cst_5 = arith.constant 0.000000e+00 : f32
    %9 = vector.broadcast %cst_5 : f32 to vector<16x128xf32>
    %10 = arith.maximumf %8, %9 : vector<16x128xf32>
    %11 = arith.truncf %10 : vector<16x128xf32> to vector<16x128xbf16>
    %c0_6 = arith.constant 0 : index
    %c0_7 = arith.constant 0 : index
    %12 = vector.load %arg4[%c0_6, %c0_7] : memref<128x128xbf16, #tpu.memory_space<vmem>>, vector<128x128xbf16>
    %cst_8 = arith.constant dense<0.000000e+00> : vector<16x128xf32>
    %13 = tpu.matmul %3, %12, %cst_8 {dimension_numbers = #tpu.dot_dimension_numbers<[1], [0], [0], [1], [0, 0, 1, 1], [], []>} : vector<16x128xbf16>, vector<128x128xbf16>, vector<16x128xf32> -> vector<16x128xf32>
    %c0_9 = arith.constant 0 : index
    %c0_10 = arith.constant 0 : index
    %14 = vector.load %arg6[%c0_9, %c0_10] : memref<128x128xbf16, #tpu.memory_space<vmem>>, vector<128x128xbf16>
    %cst_11 = arith.constant dense<0.000000e+00> : vector<16x128xf32>
    %15 = tpu.matmul %11, %14, %cst_11 {dimension_numbers = #tpu.dot_dimension_numbers<[1], [0], [0], [1], [0, 0, 1, 1], [], []>} : vector<16x128xbf16>, vector<128x128xbf16>, vector<16x128xf32> -> vector<16x128xf32>
    %16 = arith.addf %13, %15 : vector<16x128xf32>
    %c0_12 = arith.constant 0 : index
    %c0_13 = arith.constant 0 : index
    %17 = vector.load %arg5[%c0_12, %c0_13] : memref<1x128xf32, #tpu.memory_space<vmem>>, vector<1x128xf32>
    %18 = vector.broadcast %17 : vector<1x128xf32> to vector<16x128xf32>
    %19 = arith.addf %16, %18 : vector<16x128xf32>
    %c0_14 = arith.constant 0 : index
    %c0_15 = arith.constant 0 : index
    %20 = vector.load %arg7[%c0_14, %c0_15] : memref<1x128xf32, #tpu.memory_space<vmem>>, vector<1x128xf32>
    %c0_16 = arith.constant 0 : index
    %c0_17 = arith.constant 0 : index
    %21 = vector.load %arg8[%c0_16, %c0_17] : memref<1x128xf32, #tpu.memory_space<vmem>>, vector<1x128xf32>
    %cst_18 = arith.constant 0.000000e+00 : f32
    %22 = vector.shape_cast %2 : vector<1x128xi1> to vector<1x128xi1>
    %23 = vector.broadcast %22 : vector<1x128xi1> to vector<16x128xi1>
    %24 = vector.broadcast %cst_18 : f32 to vector<16x128xf32>
    %25 = arith.select %23, %19, %24 : vector<16x128xi1>, vector<16x128xf32>
    %cst_19 = arith.constant dense<0.000000e+00> : vector<16xf32>
    %26 = vector.multi_reduction <add>, %25, %cst_19 [1] : vector<16x128xf32> to vector<16xf32>
    %27 = vector.shape_cast %26 : vector<16xf32> to vector<16x1xf32>
    %cst_20 = arith.constant 3.125000e-02 : f32
    %28 = vector.broadcast %cst_20 : f32 to vector<16x1xf32>
    %29 = arith.mulf %27, %28 : vector<16x1xf32>
    %30 = vector.broadcast %29 : vector<16x1xf32> to vector<16x128xf32>
    %31 = arith.subf %19, %30 : vector<16x128xf32>
    %cst_21 = arith.constant 0.000000e+00 : f32
    %32 = vector.shape_cast %2 : vector<1x128xi1> to vector<1x128xi1>
    %33 = vector.broadcast %32 : vector<1x128xi1> to vector<16x128xi1>
    %34 = vector.broadcast %cst_21 : f32 to vector<16x128xf32>
    %35 = arith.select %33, %31, %34 : vector<16x128xi1>, vector<16x128xf32>
    %36 = arith.mulf %35, %35 : vector<16x128xf32>
    %cst_22 = arith.constant dense<0.000000e+00> : vector<16xf32>
    %37 = vector.multi_reduction <add>, %36, %cst_22 [1] : vector<16x128xf32> to vector<16xf32>
    %38 = vector.shape_cast %37 : vector<16xf32> to vector<16x1xf32>
    %cst_23 = arith.constant 3.125000e-02 : f32
    %39 = vector.broadcast %cst_23 : f32 to vector<16x1xf32>
    %40 = arith.mulf %38, %39 : vector<16x1xf32>
    %cst_24 = arith.constant 9.99999974E-6 : f32
    %41 = vector.broadcast %cst_24 : f32 to vector<16x1xf32>
    %42 = arith.addf %40, %41 : vector<16x1xf32>
    %43 = math.rsqrt %42 : vector<16x1xf32>
    %44 = vector.broadcast %43 : vector<16x1xf32> to vector<16x128xf32>
    %45 = arith.mulf %35, %44 : vector<16x128xf32>
    %46 = vector.broadcast %20 : vector<1x128xf32> to vector<16x128xf32>
    %47 = arith.mulf %45, %46 : vector<16x128xf32>
    %48 = vector.broadcast %21 : vector<1x128xf32> to vector<16x128xf32>
    %49 = arith.addf %47, %48 : vector<16x128xf32>
    %c0_25 = arith.constant 0 : index
    %c0_26 = arith.constant 0 : index
    %50 = vector.load %arg11[%c0_25, %c0_26] : memref<128x128xbf16, #tpu.memory_space<vmem>>, vector<128x128xbf16>
    %51 = arith.truncf %49 : vector<16x128xf32> to vector<16x128xbf16>
    %cst_27 = arith.constant dense<0.000000e+00> : vector<16x128xf32>
    %52 = tpu.matmul %51, %50, %cst_27 {dimension_numbers = #tpu.dot_dimension_numbers<[1], [0], [0], [1], [0, 0, 1, 1], [], []>} : vector<16x128xbf16>, vector<128x128xbf16>, vector<16x128xf32> -> vector<16x128xf32>
    %c0_28 = arith.constant 0 : index
    %c0_29 = arith.constant 0 : index
    %53 = vector.load %arg12[%c0_28, %c0_29] : memref<1x128xf32, #tpu.memory_space<vmem>>, vector<1x128xf32>
    %54 = vector.broadcast %53 : vector<1x128xf32> to vector<16x128xf32>
    %55 = arith.addf %52, %54 : vector<16x128xf32>
    %cst_30 = arith.constant 0.000000e+00 : f32
    %56 = vector.broadcast %cst_30 : f32 to vector<16x128xf32>
    %57 = arith.maximumf %55, %56 : vector<16x128xf32>
    %58 = arith.truncf %57 : vector<16x128xf32> to vector<16x128xbf16>
    %c0_31 = arith.constant 0 : index
    %c0_32 = arith.constant 0 : index
    %59 = vector.load %arg13[%c0_31, %c0_32] : memref<128x128xbf16, #tpu.memory_space<vmem>>, vector<128x128xbf16>
    %cst_33 = arith.constant dense<0.000000e+00> : vector<16x128xf32>
    %60 = tpu.matmul %58, %59, %cst_33 {dimension_numbers = #tpu.dot_dimension_numbers<[1], [0], [0], [1], [0, 0, 1, 1], [], []>} : vector<16x128xbf16>, vector<128x128xbf16>, vector<16x128xf32> -> vector<16x128xf32>
    %c0_34 = arith.constant 0 : index
    %c0_35 = arith.constant 0 : index
    %61 = vector.load %arg14[%c0_34, %c0_35] : memref<1x128xf32, #tpu.memory_space<vmem>>, vector<1x128xf32>
    %62 = vector.broadcast %61 : vector<1x128xf32> to vector<16x128xf32>
    %63 = arith.addf %60, %62 : vector<16x128xf32>
    %64 = arith.addf %19, %63 : vector<16x128xf32>
    %c0_36 = arith.constant 0 : index
    %c0_37 = arith.constant 0 : index
    %65 = vector.load %arg9[%c0_36, %c0_37] : memref<1x128xf32, #tpu.memory_space<vmem>>, vector<1x128xf32>
    %c0_38 = arith.constant 0 : index
    %c0_39 = arith.constant 0 : index
    %66 = vector.load %arg10[%c0_38, %c0_39] : memref<1x128xf32, #tpu.memory_space<vmem>>, vector<1x128xf32>
    %cst_40 = arith.constant 0.000000e+00 : f32
    %67 = vector.shape_cast %2 : vector<1x128xi1> to vector<1x128xi1>
    %68 = vector.broadcast %67 : vector<1x128xi1> to vector<16x128xi1>
    %69 = vector.broadcast %cst_40 : f32 to vector<16x128xf32>
    %70 = arith.select %68, %64, %69 : vector<16x128xi1>, vector<16x128xf32>
    %cst_41 = arith.constant dense<0.000000e+00> : vector<16xf32>
    %71 = vector.multi_reduction <add>, %70, %cst_41 [1] : vector<16x128xf32> to vector<16xf32>
    %72 = vector.shape_cast %71 : vector<16xf32> to vector<16x1xf32>
    %cst_42 = arith.constant 3.125000e-02 : f32
    %73 = vector.broadcast %cst_42 : f32 to vector<16x1xf32>
    %74 = arith.mulf %72, %73 : vector<16x1xf32>
    %75 = vector.broadcast %74 : vector<16x1xf32> to vector<16x128xf32>
    %76 = arith.subf %64, %75 : vector<16x128xf32>
    %cst_43 = arith.constant 0.000000e+00 : f32
    %77 = vector.shape_cast %2 : vector<1x128xi1> to vector<1x128xi1>
    %78 = vector.broadcast %77 : vector<1x128xi1> to vector<16x128xi1>
    %79 = vector.broadcast %cst_43 : f32 to vector<16x128xf32>
    %80 = arith.select %78, %76, %79 : vector<16x128xi1>, vector<16x128xf32>
    %81 = arith.mulf %80, %80 : vector<16x128xf32>
    %cst_44 = arith.constant dense<0.000000e+00> : vector<16xf32>
    %82 = vector.multi_reduction <add>, %81, %cst_44 [1] : vector<16x128xf32> to vector<16xf32>
    %83 = vector.shape_cast %82 : vector<16xf32> to vector<16x1xf32>
    %cst_45 = arith.constant 3.125000e-02 : f32
    %84 = vector.broadcast %cst_45 : f32 to vector<16x1xf32>
    %85 = arith.mulf %83, %84 : vector<16x1xf32>
    %cst_46 = arith.constant 9.99999974E-6 : f32
    %86 = vector.broadcast %cst_46 : f32 to vector<16x1xf32>
    %87 = arith.addf %85, %86 : vector<16x1xf32>
    %88 = math.rsqrt %87 : vector<16x1xf32>
    %89 = vector.broadcast %88 : vector<16x1xf32> to vector<16x128xf32>
    %90 = arith.mulf %80, %89 : vector<16x128xf32>
    %91 = vector.broadcast %65 : vector<1x128xf32> to vector<16x128xf32>
    %92 = arith.mulf %90, %91 : vector<16x128xf32>
    %93 = vector.broadcast %66 : vector<1x128xf32> to vector<16x128xf32>
    %94 = arith.addf %92, %93 : vector<16x128xf32>
    %c0_47 = arith.constant 0 : index
    %c0_48 = arith.constant 0 : index
    %95 = vector.load %arg15[%c0_47, %c0_48] : memref<128x128xbf16, #tpu.memory_space<vmem>>, vector<128x128xbf16>
    %96 = arith.truncf %94 : vector<16x128xf32> to vector<16x128xbf16>
    %cst_49 = arith.constant dense<0.000000e+00> : vector<16x128xf32>
    %97 = tpu.matmul %96, %95, %cst_49 {dimension_numbers = #tpu.dot_dimension_numbers<[1], [0], [0], [1], [0, 0, 1, 1], [], []>} : vector<16x128xbf16>, vector<128x128xbf16>, vector<16x128xf32> -> vector<16x128xf32>
    %c0_50 = arith.constant 0 : index
    %c0_51 = arith.constant 0 : index
    %98 = vector.load %arg16[%c0_50, %c0_51] : memref<1x128xf32, #tpu.memory_space<vmem>>, vector<1x128xf32>
    %99 = vector.broadcast %98 : vector<1x128xf32> to vector<16x128xf32>
    %100 = arith.addf %97, %99 : vector<16x128xf32>
    %c0_52 = arith.constant 0 : index
    %c0_53 = arith.constant 0 : index
    %101 = vector.load %arg17[%c0_52, %c0_53] : memref<16x128xf32, #tpu.memory_space<vmem>>, vector<16x128xf32>
    tpu.vector_store %arg17[%c0_52, %c0_53], %100 {strides = array<i32>} : memref<16x128xf32, #tpu.memory_space<vmem>>, vector<16x128xf32>,
    return
  }
  func.func @transform_0(%arg0: i32) -> (i32, i32) {
    %c0_i32 = arith.constant 0 : i32
    %c0_i32_0 = arith.constant 0 : i32
    return %arg0, %c0_i32 : i32, i32
  }
  func.func @transform_1(%arg0: i32) -> (i32, i32) {
    %c0_i32 = arith.constant 0 : i32
    %c0_i32_0 = arith.constant 0 : i32
    %c0_i32_1 = arith.constant 0 : i32
    return %c0_i32, %c0_i32_0 : i32, i32
  }
  func.func @transform_2(%arg0: i32) -> (i32, i32) {
    %c0_i32 = arith.constant 0 : i32
    %c0_i32_0 = arith.constant 0 : i32
    %c0_i32_1 = arith.constant 0 : i32
    return %c0_i32, %c0_i32_0 : i32, i32
  }
  func.func @transform_3(%arg0: i32) -> (i32, i32) {
    %c0_i32 = arith.constant 0 : i32
    %c0_i32_0 = arith.constant 0 : i32
    %c0_i32_1 = arith.constant 0 : i32
    return %c0_i32, %c0_i32_0 : i32, i32
  }
  func.func @transform_4(%arg0: i32) -> (i32, i32) {
    %c0_i32 = arith.constant 0 : i32
    %c0_i32_0 = arith.constant 0 : i32
    %c0_i32_1 = arith.constant 0 : i32
    return %c0_i32, %c0_i32_0 : i32, i32
  }
  func.func @transform_5(%arg0: i32) -> (i32, i32) {
    %c0_i32 = arith.constant 0 : i32
    %c0_i32_0 = arith.constant 0 : i32
    %c0_i32_1 = arith.constant 0 : i32
    return %c0_i32, %c0_i32_0 : i32, i32
  }
  func.func @transform_6(%arg0: i32) -> (i32, i32) {
    %c0_i32 = arith.constant 0 : i32
    %c0_i32_0 = arith.constant 0 : i32
    %c0_i32_1 = arith.constant 0 : i32
    return %c0_i32, %c0_i32_0 : i32, i32
  }
  func.func @transform_7(%arg0: i32) -> (i32, i32) {
    %c0_i32 = arith.constant 0 : i32
    %c0_i32_0 = arith.constant 0 : i32
    %c0_i32_1 = arith.constant 0 : i32
    return %c0_i32, %c0_i32_0 : i32, i32
  }
  func.func @transform_8(%arg0: i32) -> (i32, i32) {
    %c0_i32 = arith.constant 0 : i32
    %c0_i32_0 = arith.constant 0 : i32
    %c0_i32_1 = arith.constant 0 : i32
    return %c0_i32, %c0_i32_0 : i32, i32
  }
  func.func @transform_9(%arg0: i32) -> (i32, i32) {
    %c0_i32 = arith.constant 0 : i32
    %c0_i32_0 = arith.constant 0 : i32
    %c0_i32_1 = arith.constant 0 : i32
    return %c0_i32, %c0_i32_0 : i32, i32
  }
  func.func @transform_10(%arg0: i32) -> (i32, i32) {
    %c0_i32 = arith.constant 0 : i32
    %c0_i32_0 = arith.constant 0 : i32
    %c0_i32_1 = arith.constant 0 : i32
    return %c0_i32, %c0_i32_0 : i32, i32
  }
  func.func @transform_11(%arg0: i32) -> (i32, i32) {
    %c0_i32 = arith.constant 0 : i32
    %c0_i32_0 = arith.constant 0 : i32
    %c0_i32_1 = arith.constant 0 : i32
    return %c0_i32, %c0_i32_0 : i32, i32
  }
  func.func @transform_12(%arg0: i32) -> (i32, i32) {
    %c0_i32 = arith.constant 0 : i32
    %c0_i32_0 = arith.constant 0 : i32
    %c0_i32_1 = arith.constant 0 : i32
    return %c0_i32, %c0_i32_0 : i32, i32
  }
  func.func @transform_13(%arg0: i32) -> (i32, i32) {
    %c0_i32 = arith.constant 0 : i32
    %c0_i32_0 = arith.constant 0 : i32
    %c0_i32_1 = arith.constant 0 : i32
    return %c0_i32, %c0_i32_0 : i32, i32
  }
  func.func @transform_14(%arg0: i32) -> (i32, i32) {
    %c0_i32 = arith.constant 0 : i32
    %c0_i32_0 = arith.constant 0 : i32
    %c0_i32_1 = arith.constant 0 : i32
    return %c0_i32, %c0_i32_0 : i32, i32
  }
  func.func @transform_15(%arg0: i32) -> (i32, i32) {
    %c0_i32 = arith.constant 0 : i32
    %c0_i32_0 = arith.constant 0 : i32
    %c0_i32_1 = arith.constant 0 : i32
    return %c0_i32, %c0_i32_0 : i32, i32
  }
  func.func @transform_16(%arg0: i32) -> (i32, i32) {
    %c0_i32 = arith.constant 0 : i32
    %c0_i32_0 = arith.constant 0 : i32
    return %arg0, %c0_i32 : i32, i32
  }
}

</mosaic_0001>

<bundles_post_ra>
// kernel: tpu_custom_call.1
= control target key start
LH: loop header
LB: loop body
LE: loop exit
PB: predicated region body
PF: predicated region fallthrough
CT: control target
= control target key end

     0   :  { %s1792_s0 = inlined_call_operand.hbm [shape: bf16[16,128], index: 0, kind: input, shape index: {}]   ;;  %s1793_s1 = inlined_call_operand.hbm [shape: bf16[128,128], index: 1, kind: input, shape index: {}]   ;;  %s1794_s2 = inlined_call_operand.vmem [shape: f32[1,128], index: 2, kind: input, shape index: {}]   ;;  %s1795_s3 = inlined_call_operand.hbm [shape: bf16[128,128], index: 3, kind: input, shape index: {}]   ;;  %s1796_s4 = inlined_call_operand.vmem [shape: f32[1,128], index: 4, kind: input, shape index: {}]   ;;  %s1797_s5 = inlined_call_operand.hbm [shape: bf16[128,128], index: 5, kind: input, shape index: {}]   ;;  %s1798_s6 = inlined_call_operand.vmem [shape: f32[1,128], index: 6, kind: input, shape index: {}]   ;;  %s1799_s7 = inlined_call_operand.vmem [shape: f32[1,128], index: 7, kind: input, shape index: {}]   ;;  %s1800_s8 = inlined_call_operand.vmem [shape: f32[1,128], index: 8, kind: input, shape index: {}]   ;;  %s1801_s9 = inlined_call_operand.vmem [shape: f32[1,128], index: 9, kind: input, shape index: {}]   ;;  %s1802_s10 = inlined_call_operand.hbm [shape: bf16[128,128], index: 10, kind: input, shape index: {}]   ;;  %s1803_s11 = inlined_call_operand.vmem [shape: f32[1,128], index: 11, kind: input, shape index: {}]   ;;  %s1804_s12 = inlined_call_operand.hbm [shape: bf16[128,128], index: 12, kind: input, shape index: {}]   ;;  %s1805_s13 = inlined_call_operand.vmem [shape: f32[1,128], index: 13, kind: input, shape index: {}]   ;;  %s1806_s14 = inlined_call_operand.hbm [shape: bf16[128,128], index: 14, kind: input, shape index: {}]   ;;  %s1807_s15 = inlined_call_operand.vmem [shape: f32[1,128], index: 15, kind: input, shape index: {}]   ;;  %s1808_s16 = inlined_call_operand.hbm [shape: f32[16,128], index: 16, kind: output, shape index: {}]  }
   0x1   :  { %1810 = sst [smem:[#allocation20_spill]] %s1792_s0 }
   0x2   :  { %21 = vsyncpa [#allocation3], 0 }
   0x3   :  { %22 = vsyncpa [#allocation6], 0 }
   0x4   :  { %23 = vsyncpa [#allocation9], 0 }
   0x5   :  { %24 = vsyncpa [#allocation12], 0 }
   0x6   :  { %25 = vsyncpa [#allocation4], 0  ;;  %s1439_s21 = smov [#allocation5]   ;;  %s1440_s23 = smov [#allocation8]  }
   0x7   :  { %s43_s22 = sshll.u32 %s1439_s21, 4  ;;  %s71_s24 = sshll.u32 %s1440_s23, 4  ;;  %s44_s22 = int_to_ptr.vmem [resolvable:$true] %s43_s22  ;;  %s1538_s24 = int_to_ptr.vmem [resolvable:$true] %s71_s24 }
   0x8   :  { %s1253_s27 = scalar_lea.hbm %s1793_s1, 1024 }
   0x9   :  { %p1254_p0 = scmp.ne.s32.totalorder %s1793_s1, %s1253_s27  ;;  %p1257_p1 = scmp.lt.u32.totalorder %s1253_s27, %s1793_s1 }
   0xb   :  { %p1259_p2 = pnand %p1257_p1, %p1254_p0 }
   0xd   :  { %1262 = shalt.err (!%p1259_p2)
}
   0xe   :  { %s1263_s17 = scalar_lea.vmem %s44_s22, 1024  ;;  %p1268_p4 = scmp.lt.s32.totalorder %s44_s22, %s44_s22 }
   0xf   :  { %p1264_p3 = scmp.ne.s32.totalorder %s44_s22, %s1263_s17  ;;  %p1269_p5 = scmp.lt.s32.totalorder %s1263_s17, %s1263_s17 }
  0x11   :  { %p1270_p6 = por %p1269_p5, %p1268_p4 }
  0x13   :  { %p1271_p7 = pnand %p1270_p6, %p1264_p3 }
  0x15   :  { %1274 = shalt.err (!%p1271_p7)
}
  0x16   :  { %s1441_s18 = smov 64   ;;  %s1442_s19 = smov 4  }
  0x17   :  { %49 = dma.hbm_to_vmem [thread:$0]  %s1793_s1, 1024, %s44_s22, [#allocation6], %s1441_s18, %s1441_s18, %s1442_s19  }
  0x18   :  { %s1275_s26 = scalar_lea.hbm %s1797_s5, 1024 }
  0x19   :  { %p1276_p8 = scmp.ne.s32.totalorder %s1797_s5, %s1275_s26  ;;  %p1279_p9 = scmp.lt.u32.totalorder %s1275_s26, %s1797_s5 }
  0x1b   :  { %p1281_p10 = pnand %p1279_p9, %p1276_p8 }
  0x1d   :  { %1284 = shalt.err (!%p1281_p10)
}
  0x1e   :  { %s1285_s0 = scalar_lea.vmem %s1538_s24, 1024  ;;  %p1290_p12 = scmp.lt.s32.totalorder %s1538_s24, %s1538_s24 }
  0x1f   :  { %p1286_p11 = scmp.ne.s32.totalorder %s1538_s24, %s1285_s0  ;;  %p1291_p13 = scmp.lt.s32.totalorder %s1285_s0, %s1285_s0 }
  0x21   :  { %p1292_p0 = por %p1291_p13, %p1290_p12 }
  0x23   :  { %p1293_p1 = pnand %p1292_p0, %p1286_p11 }
  0x25   :  { %1296 = shalt.err (!%p1293_p1)
}
  0x26   :  { %77 = dma.hbm_to_vmem [thread:$0]  %s1797_s5, 1024, %s1538_s24, [#allocation9], %s1441_s18, %s1441_s18, %s1442_s19  }
  0x27   :  { %s1443_s17 = smov [#allocation11]   ;;  %s1444_s21 = smov [#allocation2]  }
  0x28   :  { %s105_s20 = sshll.u32 %s1443_s17, 4  ;;  %s31_s23 = sshll.u32 %s1444_s21, 4  ;;  %s106_s20 = int_to_ptr.vmem [resolvable:$true] %s105_s20  ;;  %s1575_s23 = int_to_ptr.vmem [resolvable:$true] %s31_s23 }
  0x29   :  { %s1297_s27 = scalar_lea.hbm %s1804_s12, 1024 }
  0x2a   :  { %p1298_p2 = scmp.ne.s32.totalorder %s1804_s12, %s1297_s27  ;;  %p1301_p3 = scmp.lt.u32.totalorder %s1297_s27, %s1804_s12 }
  0x2c   :  { %p1303_p4 = pnand %p1301_p3, %p1298_p2 }
  0x2e   :  { %1306 = shalt.err (!%p1303_p4)
}
  0x2f   :  { %s1307_s5 = scalar_lea.vmem %s106_s20, 1024  ;;  %p1312_p6 = scmp.lt.s32.totalorder %s106_s20, %s106_s20 }
  0x30   :  { %p1308_p5 = scmp.ne.s32.totalorder %s106_s20, %s1307_s5  ;;  %p1313_p7 = scmp.lt.s32.totalorder %s1307_s5, %s1307_s5 }
  0x32   :  { %p1314_p8 = por %p1313_p7, %p1312_p6 }
  0x34   :  { %p1315_p9 = pnand %p1314_p8, %p1308_p5 }
  0x36   :  { %1318 = shalt.err (!%p1315_p9)
}
  0x37   :  { %111 = dma.hbm_to_vmem [thread:$0]  %s1804_s12, 1024, %s106_s20, [#allocation12], %s1441_s18, %s1441_s18, %s1442_s19  }
  0x38   :  { %s1811_s21 = sld [smem:[#allocation20_spill]] }
  0x3e   :  { %s1319_s25 = scalar_lea.hbm %s1811_s21, 128 }
  0x3f   :  { %p1320_p10 = scmp.ne.s32.totalorder %s1811_s21, %s1319_s25  ;;  %p1323_p11 = scmp.lt.u32.totalorder %s1319_s25, %s1811_s21 }
  0x41   :  { %p1325_p12 = pnand %p1323_p11, %p1320_p10 }
  0x43   :  { %1328 = shalt.err (!%p1325_p12)
}
  0x44   :  { %s1329_s30 = scalar_lea.vmem %s1575_s23, 128  ;;  %p1334_p0 = scmp.lt.s32.totalorder %s1575_s23, %s1575_s23 }
  0x45   :  { %p1330_p13 = scmp.ne.s32.totalorder %s1575_s23, %s1329_s30  ;;  %p1335_p1 = scmp.lt.s32.totalorder %s1329_s30, %s1329_s30 }
  0x47   :  { %p1336_p2 = por %p1335_p1, %p1334_p0 }
  0x49   :  { %p1337_p3 = pnand %p1336_p2, %p1330_p13 }
  0x4b   :  { %1340 = shalt.err (!%p1337_p3)
}
  0x4c   :  { %37 = dma.hbm_to_vmem [thread:$0]  %s1811_s21, 128, %s1575_s23, [#allocation3], %s1441_s18, %s1441_s18, %s1442_s19  }
  0x4d   :  { %s1445_s0 = smov [#allocation7]   ;;  %s1446_s24 = smov [#allocation10]  }
  0x4e   :  { %s57_s5 = sshll.u32 %s1445_s0, 4  ;;  %s91_s1 = sshll.u32 %s1446_s24, 4  ;;  %s58_s5 = int_to_ptr.vmem [resolvable:$true] %s57_s5  ;;  %s1612_s1 = int_to_ptr.vmem [resolvable:$true] %s91_s1 }
  0x4f   :  { %s1341_s25 = scalar_lea.hbm %s1795_s3, 1024 }
  0x50   :  { %p1342_p4 = scmp.ne.s32.totalorder %s1795_s3, %s1341_s25  ;;  %p1345_p5 = scmp.lt.u32.totalorder %s1341_s25, %s1795_s3 }
  0x52   :  { %p1347_p6 = pnand %p1345_p5, %p1342_p4 }
  0x54   :  { %1350 = shalt.err (!%p1347_p6)
}
  0x55   :  { %s1351_s23 = scalar_lea.vmem %s58_s5, 1024  ;;  %p1356_p8 = scmp.lt.s32.totalorder %s58_s5, %s58_s5 }
  0x56   :  { %p1352_p7 = scmp.ne.s32.totalorder %s58_s5, %s1351_s23  ;;  %p1357_p9 = scmp.lt.s32.totalorder %s1351_s23, %s1351_s23 }
  0x58   :  { %p1358_p10 = por %p1357_p9, %p1356_p8 }
  0x5a   :  { %p1359_p11 = pnand %p1358_p10, %p1352_p7 }
  0x5c   :  { %1362 = shalt.err (!%p1359_p11)
}
  0x5d   :  { %63 = dma.hbm_to_vmem [thread:$0]  %s1795_s3, 1024, %s58_s5, [#allocation6], %s1441_s18, %s1441_s18, %s1442_s19  }
  0x5e   :  { %s1363_s0 = scalar_lea.hbm %s1802_s10, 1024 }
  0x5f   :  { %p1364_p12 = scmp.ne.s32.totalorder %s1802_s10, %s1363_s0  ;;  %p1367_p13 = scmp.lt.u32.totalorder %s1363_s0, %s1802_s10 }
  0x61   :  { %p1369_p0 = pnand %p1367_p13, %p1364_p12 }
  0x63   :  { %1372 = shalt.err (!%p1369_p0)
}
  0x64   :  { %s1373_s26 = scalar_lea.vmem %s1612_s1, 1024  ;;  %p1378_p2 = scmp.lt.s32.totalorder %s1612_s1, %s1612_s1 }
  0x65   :  { %p1374_p1 = scmp.ne.s32.totalorder %s1612_s1, %s1373_s26  ;;  %p1379_p3 = scmp.lt.s32.totalorder %s1373_s26, %s1373_s26 }
  0x67   :  { %p1380_p4 = por %p1379_p3, %p1378_p2 }
  0x69   :  { %p1381_p5 = pnand %p1380_p4, %p1374_p1 }
  0x6b   :  { %1384 = shalt.err (!%p1381_p5)
}
  0x6c   :  { %97 = dma.hbm_to_vmem [thread:$0]  %s1802_s10, 1024, %s1612_s1, [#allocation9], %s1441_s18, %s1441_s18, %s1442_s19  }
  0x6d   :  { %s1447_s27 = smov [#allocation13]   ;;  %s1385_s21 = scalar_lea.hbm %s1806_s14, 1024 }
  0x6e   :  { %s119_s28 = sshll.u32 %s1447_s27, 4  ;;  %p1386_p6 = scmp.ne.s32.totalorder %s1806_s14, %s1385_s21  ;;  %s120_s28 = int_to_ptr.vmem [resolvable:$true] %s119_s28 }
  0x6f   :  { %p1389_p7 = scmp.lt.u32.totalorder %s1385_s21, %s1806_s14 }
  0x71   :  { %p1391_p8 = pnand %p1389_p7, %p1386_p6 }
  0x73   :  { %1394 = shalt.err (!%p1391_p8)
}
  0x74   :  { %s1395_s24 = scalar_lea.vmem %s120_s28, 1024  ;;  %p1400_p10 = scmp.lt.s32.totalorder %s120_s28, %s120_s28 }
  0x75   :  { %p1396_p9 = scmp.ne.s32.totalorder %s120_s28, %s1395_s24  ;;  %p1401_p11 = scmp.lt.s32.totalorder %s1395_s24, %s1395_s24 }
  0x77   :  { %p1402_p12 = por %p1401_p11, %p1400_p10 }
  0x79   :  { %p1403_p13 = pnand %p1402_p12, %p1396_p9 }
  0x7b   :  { %1406 = shalt.err (!%p1403_p13)
}
  0x7c   :  { %125 = dma.hbm_to_vmem [thread:$0]  %s1806_s14, 1024, %s120_s28, [#allocation12], %s1441_s18, %s1441_s18, %s1442_s19  }
  0x7d   :  { %1429 = dma.done.wait [#allocation3], 128  }
  0x7e   :  { %1430 = vsyncadd [#allocation3], 4294967168 }
  0x7f   :  { %1431 = dma.done.wait [#allocation6], 2048  }
  0x80   :  { %1432 = vsyncadd [#allocation6], 4294965248 }
  0x81   :  { %1433 = dma.done.wait [#allocation9], 2048  }
  0x82   :  { %1434 = vsyncadd [#allocation9], 4294965248 }
  0x83   :  { %1435 = dma.done.wait [#allocation12], 2048  }
  0x84   :  { %1436 = vsyncadd [#allocation12], 4294965248  ;;  %v1448_v0 = vmov 0.0   ;;  %vm1449_vm0 = vmmov 0   ;;  %v1196_v1 = vld [vmem:[#allocation5] sm:$0xff]   ;;  %v1197_v2 = vld [vmem:[#allocation5 + $0x8] sm:$0xff]   ;;  %v150_v40 = vlaneseq }
  0x85   :  { %1062 = vmatprep.subr.bf16.mxu0 %v1448_v0  ;;  %1078 = vmatprep.mubr.msk.bf16.mxu0 %vm1449_vm0, %v1448_v0  ;;  %v1198_v3 = vld [vmem:[#allocation5 + $0x10] sm:$0xff]   ;;  %v1199_v4 = vld [vmem:[#allocation5 + $0x18] sm:$0xff]   ;;  %v1206_v5 = vld [vmem:[#allocation8] sm:$0xff]   ;;  %s1450_s23 = smov [#allocation14]  }
  0x86   :  { %1082 = vmatprep.subr.bf16.mxu1 %v1448_v0  ;;  %1098 = vmatprep.mubr.msk.bf16.mxu1 %vm1449_vm0, %v1448_v0  ;;  %v1208_v6 = vld [vmem:[#allocation8 + $0x8] sm:$0xff]   ;;  %v1200_v7 = vld [vmem:[#allocation5 + $0x20] sm:$0xff]   ;;  %v1210_v8 = vld [vmem:[#allocation8 + $0x10] sm:$0xff]   ;;  %v1703_v41 = vand.u32 127, %v150_v40  ;;  %s935_s21 = sshll.u32 %s1450_s23, 4  ;;  %s936_s21 = int_to_ptr.vmem [resolvable:$true] %s935_s21 }
  0x87   :  { %1063 = vmatpush3.bf16.msra.mxu0 %v1196_v1  ;;  %1083 = vmatpush3.bf16.msra.mxu1 %v1206_v5  ;;  %v1201_v9 = vld [vmem:[#allocation5 + $0x28] sm:$0xff]   ;;  %v1212_v10 = vld [vmem:[#allocation8 + $0x18] sm:$0xff]   ;;  %v1202_v11 = vld [vmem:[#allocation5 + $0x30] sm:$0xff]   ;;  %p1412_p1 = scmp.lt.s32.totalorder %s936_s21, %s936_s21 }
  0x88   :  { %1064 = vmatprep.subr.bf16.mxu0 %v1448_v0  ;;  %1084 = vmatprep.subr.bf16.mxu1 %v1448_v0  ;;  %v1214_v12 = vld [vmem:[#allocation8 + $0x20] sm:$0xff]   ;;  %v1203_v13 = vld [vmem:[#allocation5 + $0x38] sm:$0xff]   ;;  %v1216_v14 = vld [vmem:[#allocation8 + $0x28] sm:$0xff]   ;;  %vm152_vm1 = vcmp.lt.s32.totalorder %v1703_v41, 32 }
  0x89   :  { %v1204_v15 = vld [vmem:[#allocation2] sm:$0xff]   ;;  %v1205_v16 = vld [vmem:[#allocation7] sm:$0xff]   ;;  %v1207_v17 = vld [vmem:[#allocation7 + $0x8] sm:$0xff]  }
  0x8a   :  { %v1209_v18 = vld [vmem:[#allocation7 + $0x10] sm:$0xff]   ;;  %v1211_v19 = vld [vmem:[#allocation7 + $0x18] sm:$0xff]   ;;  %v1213_v20 = vld [vmem:[#allocation7 + $0x20] sm:$0xff]  }
  0x8b   :  { %1065 = vmatpush3.bf16.msra.mxu0 %v1197_v2  ;;  %1085 = vmatpush3.bf16.msra.mxu1 %v1208_v6  ;;  %v1215_v21 = vld [vmem:[#allocation7 + $0x28] sm:$0xff]   ;;  %v1217_v22 = vld [vmem:[#allocation7 + $0x30] sm:$0xff]   ;;  %v1219_v24 = vld [vmem:[#allocation7 + $0x38] sm:$0xff]  }
  0x8c   :  { %1066 = vmatprep.subr.bf16.mxu0 %v1448_v0  ;;  %1086 = vmatprep.subr.bf16.mxu1 %v1448_v0  ;;  %v1218_v23 = vld [vmem:[#allocation8 + $0x30] sm:$0xff]   ;;  %v1220_v25 = vld [vmem:[#allocation8 + $0x38] sm:$0xff]   ;;  %v1221_v53 = vld [vmem:[#allocation10] sm:$0xff]  }
  0x8d   :  { %v950_v26 = vld [vmem:[%s1794_s2] ss:$0 sm:$0xff]  ;;  %v1222_v1 = vld [vmem:[#allocation10 + $0x8] sm:$0xff]   ;;  %v1223_v2 = vld [vmem:[#allocation10 + $0x10] sm:$0xff]  }
  0x8e   :  { %v976_v43 = vld [vmem:[%s1796_s4] ss:$0 sm:$0xff]  ;;  %v1226_v5 = vld [vmem:[#allocation10 + $0x28] sm:$0xff]   ;;  %v1227_v6 = vld [vmem:[#allocation10 + $0x30] sm:$0xff]  }
  0x8f   :  { %1067 = vmatpush3.bf16.msra.mxu0 %v1198_v3  ;;  %1087 = vmatpush3.bf16.msra.mxu1 %v1210_v8  ;;  %v1224_v3 = vld [vmem:[#allocation10 + $0x18] sm:$0xff]   ;;  %v1229_v8 = vld [vmem:[#allocation11] sm:$0xff]   ;;  %v1243_v41 = vld [vmem:[#allocation13 + $0x30] sm:$0xff]  }
  0x90   :  { %1068 = vmatprep.subr.bf16.mxu0 %v1448_v0  ;;  %1088 = vmatprep.subr.bf16.mxu1 %v1448_v0 }
  0x93   :  { %1069 = vmatpush3.bf16.msra.mxu0 %v1199_v4  ;;  %1089 = vmatpush3.bf16.msra.mxu1 %v1212_v10  ;;  %v1225_v4 = vld [vmem:[#allocation10 + $0x20] sm:$0xff]   ;;  %v1231_v10 = vld [vmem:[#allocation11 + $0x10] sm:$0xff]  }
  0x94   :  { %1070 = vmatprep.subr.bf16.mxu0 %v1448_v0  ;;  %1090 = vmatprep.subr.bf16.mxu1 %v1448_v0 }
  0x97   :  { %1071 = vmatpush3.bf16.msra.mxu0 %v1200_v7  ;;  %1091 = vmatpush3.bf16.msra.mxu1 %v1214_v12  ;;  %v1228_v7 = vld [vmem:[#allocation10 + $0x38] sm:$0xff]   ;;  %v1233_v12 = vld [vmem:[#allocation11 + $0x20] sm:$0xff]  }
  0x98   :  { %1072 = vmatprep.subr.bf16.mxu0 %v1448_v0  ;;  %1092 = vmatprep.subr.bf16.mxu1 %v1448_v0 }
  0x9b   :  { %1073 = vmatpush3.bf16.msra.mxu0 %v1201_v9  ;;  %1093 = vmatpush3.bf16.msra.mxu1 %v1216_v14  ;;  %v1230_v9 = vld [vmem:[#allocation11 + $0x8] sm:$0xff]  }
  0x9c   :  { %1074 = vmatprep.subr.bf16.mxu0 %v1448_v0  ;;  %1094 = vmatprep.subr.bf16.mxu1 %v1448_v0 }
  0x9f   :  { %1075 = vmatpush3.bf16.msra.mxu0 %v1202_v11  ;;  %1095 = vmatpush3.bf16.msra.mxu1 %v1218_v23  ;;  %v1232_v11 = vld [vmem:[#allocation11 + $0x18] sm:$0xff]  }
  0xa0   :  { %1076 = vmatprep.subr.bf16.mxu0 %v1448_v0  ;;  %1096 = vmatprep.subr.bf16.mxu1 %v1448_v0 }
  0xa3   :  { %1077 = vmatpush3.bf16.msra.mxu0 %v1203_v13  ;;  %1097 = vmatpush3.bf16.msra.mxu1 %v1220_v25  ;;  %v1234_v13 = vld [vmem:[#allocation11 + $0x28] sm:$0xff]  }
  0xa4   :  { %1102 = vmatprep.subr.bf16.mxu0 %v1448_v0  ;;  %1122 = vmatprep.subr.bf16.mxu1 %v1448_v0 }
  0xa6   :  { %1079 = vmatmul.mubr.bf16.vlgmr.msra.gmra.mrb[0].mxu0 %v1204_v15 }
  0xa7   :  { %1103 = vmatpush3.bf16.msra.mxu0 %v1205_v16  ;;  %1118 = vmatprep.mubr.msk.bf16.mxu0 %vm1449_vm0, %v1448_v0 }
  0xa8   :  { %1104 = vmatprep.subr.bf16.mxu0 %v1448_v0 }
  0xab   :  { %1105 = vmatpush3.bf16.msra.mxu0 %v1207_v17 }
  0xac   :  { %1106 = vmatprep.subr.bf16.mxu0 %v1448_v0 }
  0xaf   :  { %1107 = vmatpush3.bf16.msra.mxu0 %v1209_v18 }
  0xb0   :  { %1108 = vmatprep.subr.bf16.mxu0 %v1448_v0 }
  0xb3   :  { %1109 = vmatpush3.bf16.msra.mxu0 %v1211_v19 }
  0xb4   :  { %1110 = vmatprep.subr.bf16.mxu0 %v1448_v0 }
  0xb7   :  { %1111 = vmatpush3.bf16.msra.mxu0 %v1213_v20 }
  0xb8   :  { %1112 = vmatprep.subr.bf16.mxu0 %v1448_v0 }
  0xbb   :  { %1113 = vmatpush3.bf16.msra.mxu0 %v1215_v21 }
  0xbc   :  { %1114 = vmatprep.subr.bf16.mxu0 %v1448_v0 }
  0xbf   :  { %1115 = vmatpush3.bf16.msra.mxu0 %v1217_v22  ;;  %v977_v22 = vld [vmem:[%s1798_s6] ss:$0 sm:$0xff] }
  0xc0   :  { %1116 = vmatprep.subr.bf16.mxu0 %v1448_v0 }
  0xc3   :  { %1117 = vmatpush3.bf16.msra.mxu0 %v1219_v24 }
  0xc4   :  { %1142 = vmatprep.subr.bf16.mxu0 %v1448_v0 }
  0xc6   :  { %1119 = vmatmul.mubr.bf16.vlgmr.msra.gmra.mrb[4].mxu0 %v1204_v15 }
  0xc7   :  { %1158 = vmatprep.mubr.msk.bf16.mxu0 %vm1449_vm0, %v1448_v0  ;;  %1143 = vmatpush3.bf16.msra.mxu0 %v1229_v8  ;;  %v1244_v8 = vld [vmem:[#allocation13 + $0x38] sm:$0xff]  }
  0xc8   :  { %1144 = vmatprep.subr.bf16.mxu0 %v1448_v0 }
  0xcb   :  { %1145 = vmatpush3.bf16.msra.mxu0 %v1230_v9 }
  0xcc   :  { %1146 = vmatprep.subr.bf16.mxu0 %v1448_v0 }
  0xcf   :  { %1147 = vmatpush3.bf16.msra.mxu0 %v1231_v10 }
  0xd0   :  { %1148 = vmatprep.subr.bf16.mxu0 %v1448_v0 }
  0xd3   :  { %1149 = vmatpush3.bf16.msra.mxu0 %v1232_v11 }
  0xd4   :  { %1150 = vmatprep.subr.bf16.mxu0 %v1448_v0 }
  0xd7   :  { %1151 = vmatpush3.bf16.msra.mxu0 %v1233_v12 }
  0xd8   :  { %1152 = vmatprep.subr.bf16.mxu0 %v1448_v0 }
  0xdb   :  { %1153 = vmatpush3.bf16.msra.mxu0 %v1234_v13 }
  0xdc   :  { %1154 = vmatprep.subr.bf16.mxu0 %v1448_v0 }
 0x179   :  { %v266_v27 = vpop.f32.mrb[0].mxu0 }
 0x17a   :  { %v267_v28 = vadd.f32 %v950_v26, %v266_v27  ;;  %v1080_v29 = vpop.f32.mrb[1].mxu0 }
 0x17b   :  { %v269_v30 = vpop.f32.mrb[2].mxu0 }
 0x17c   :  { %v270_v31 = vadd.f32 %v950_v26, %v269_v30  ;;  %v1081_v32 = vpop.f32.mrb[3].mxu0  ;;  %v273_v33 = vmax.f32 %v267_v28, 0.0  ;;  %v978_v26 = vld [vmem:[%s1799_s7] ss:$0 sm:$0xff] }
 0x17d   :  { %v1236_v32 = vld [vmem:[#allocation11 + $0x38] sm:$0xff]  }
 0x17e   :  { %v274_v34 = vmax.f32 %v270_v31, 0.0  ;;  %v1235_v31 = vld [vmem:[#allocation11 + $0x30] sm:$0xff]  }
 0x17f   :  { %1155 = vmatpush3.bf16.msra.mxu0 %v1235_v31 }
 0x180   :  { %v275_v35 = vpack.c.bf16 %v274_v34, %v273_v33  ;;  %1156 = vmatprep.subr.bf16.mxu0 %v1448_v0  ;;  %v979_v33 = vld [vmem:[%s1803_s11] ss:$0 sm:$0xff] }
 0x182   :  { %1099 = vmatmul.mubr.bf16.vlgmr.msra.gmra.mrb[0].mxu1 %v275_v35 }
 0x183   :  { %1138 = vmatprep.mubr.msk.bf16.mxu1 %vm1449_vm0, %v1448_v0  ;;  %1123 = vmatpush3.bf16.msra.mxu1 %v1221_v53 }
 0x184   :  { %1124 = vmatprep.subr.bf16.mxu1 %v1448_v0  ;;  %1157 = vmatpush3.bf16.msra.mxu0 %v1236_v32 }
 0x187   :  { %1125 = vmatpush3.bf16.msra.mxu1 %v1222_v1 }
 0x188   :  { %1126 = vmatprep.subr.bf16.mxu1 %v1448_v0 }
 0x18b   :  { %1127 = vmatpush3.bf16.msra.mxu1 %v1223_v2 }
 0x18c   :  { %1128 = vmatprep.subr.bf16.mxu1 %v1448_v0 }
 0x18f   :  { %1129 = vmatpush3.bf16.msra.mxu1 %v1224_v3 }
 0x190   :  { %1130 = vmatprep.subr.bf16.mxu1 %v1448_v0 }
 0x193   :  { %1131 = vmatpush3.bf16.msra.mxu1 %v1225_v4  ;;  %v1239_v4 = vld [vmem:[#allocation13 + $0x10] sm:$0xff]  }
 0x194   :  { %1132 = vmatprep.subr.bf16.mxu1 %v1448_v0 }
 0x197   :  { %1133 = vmatpush3.bf16.msra.mxu1 %v1226_v5  ;;  %v1240_v5 = vld [vmem:[#allocation13 + $0x18] sm:$0xff]  }
 0x198   :  { %1134 = vmatprep.subr.bf16.mxu1 %v1448_v0 }
 0x199   :  { %v479_v36 = vpop.f32.mrb[4].mxu0 }
 0x19a   :  { %v1120_v37 = vpop.f32.mrb[5].mxu0 }
 0x19b   :  { %v482_v38 = vpop.f32.mrb[6].mxu0  ;;  %1135 = vmatpush3.bf16.msra.mxu1 %v1227_v6  ;;  %v1241_v6 = vld [vmem:[#allocation13 + $0x20] sm:$0xff]  }
 0x19c   :  { %v1121_v39 = vpop.f32.mrb[7].mxu0  ;;  %1136 = vmatprep.subr.bf16.mxu1 %v1448_v0 }
 0x19f   :  { %1137 = vmatpush3.bf16.msra.mxu1 %v1228_v7  ;;  %v1242_v7 = vld [vmem:[#allocation13 + $0x28] sm:$0xff]  }
 0x1a0   :  { %1162 = vmatprep.subr.bf16.mxu1 %v1448_v0 }
 0x255   :  { %v390_v42 = vpop.f32.mrb[0].mxu1 }
 0x256   :  { %v480_v44 = vadd.f32 %v479_v36, %v390_v42  ;;  %v1100_v45 = vpop.f32.mrb[1].mxu1 }
 0x257   :  { %v393_v46 = vpop.f32.mrb[2].mxu1 }
 0x258   :  { %v1709_v47 = vadd.f32 %v976_v43, %v480_v44  ;;  %v483_v48 = vadd.f32 %v482_v38, %v393_v46  ;;  %v1101_v49 = vpop.f32.mrb[3].mxu1  ;;  %v988_v44 = vld [vmem:[%s1805_s13] ss:$0 sm:$0xff] }
 0x25a   :  { %v1711_v50 = vadd.f32 %v976_v43, %v483_v48  ;;  %v499_v51 = vsel %vm152_vm1, %v1709_v47, 0.0 }
 0x25b   :  { %501 = vadd.xlane.f32.xlu0 %v499_v51 }
 0x25c   :  { %v500_v52 = vsel %vm152_vm1, %v1711_v50, 0.0 }
 0x25f   :  { %503 = vadd.xlane.f32.xlu0 %v500_v52 }
 0x2e8   :  { %v502_v54 = vpop.xlane.xlu0 %501 }
 0x2e9   :  { %v505_v55 = vmul.f32 0.03125, %v502_v54 }
 0x2eb   :  { %v507_v56 = vsub.f32 %v1709_v47, %v505_v55 }
 0x2ec   :  { %v504_v57 = vpop.xlane.xlu0 %503 }
 0x2ed   :  { %v506_v58 = vmul.f32 0.03125, %v504_v57  ;;  %v509_v59 = vsel %vm152_vm1, %v507_v56, 0.0  ;;  %v1237_v57 = vld [vmem:[#allocation13] sm:$0xff]  }
 0x2ee   :  { %v511_v60 = vmul.f32 %v509_v59, %v509_v59 }
 0x2ef   :  { %v508_v61 = vsub.f32 %v1711_v50, %v506_v58  ;;  %v1238_v58 = vld [vmem:[#allocation13 + $0x8] sm:$0xff]  }
 0x2f0   :  { %513 = vadd.xlane.f32.xlu1 %v511_v60 }
 0x2f1   :  { %v510_v62 = vsel %vm152_vm1, %v508_v61, 0.0 }
 0x2f2   :  { %v512_v63 = vmul.f32 %v510_v62, %v510_v62 }
 0x2f4   :  { %515 = vadd.xlane.f32.xlu1 %v512_v63 }
 0x37d   :  { %v514_v14 = vpop.xlane.xlu1 %513 }
 0x37e   :  { %v517_v15 = vmul.f32 0.03125, %v514_v14 }
 0x380   :  { %v519_v16 = vadd.f32 1e-05, %v517_v15 }
 0x381   :  { %v516_v17 = vpop.xlane.xlu1 %515 }
 0x382   :  { %1245 = vrsqrt.f32 %v519_v16  ;;  %v518_v18 = vmul.f32 0.03125, %v516_v17  ;;  %v997_v16 = vld [vmem:[%s1800_s8] ss:$0 sm:$0xff]  ;;  %s1407_s8 = scalar_lea.vmem %s936_s21, 256 }
 0x383   :  { %p1408_p0 = scmp.ne.s32.totalorder %s936_s21, %s1407_s8  ;;  %p1413_p2 = scmp.lt.s32.totalorder %s1407_s8, %s1407_s8 }
 0x384   :  { %v520_v19 = vadd.f32 1e-05, %v518_v18 }
 0x385   :  { %p1414_p3 = por %p1413_p2, %p1412_p1 }
 0x386   :  { %1247 = vrsqrt.f32 %v520_v19 }
 0x387   :  { %p1415_p4 = pnand %p1414_p3, %p1408_p0 }
 0x38c   :  { %v1246_v20 = vpop.eup %1245 }
 0x38d   :  { %v523_v21 = vmul.f32 %v1246_v20, %v509_v59 }
 0x38f   :  { %v531_v25 = vmul.f32 %v977_v22, %v523_v21 }
 0x390   :  { %v1248_v23 = vpop.eup %1247 }
 0x391   :  { %v524_v24 = vmul.f32 %v1248_v23, %v510_v62  ;;  %v539_v28 = vadd.f32 %v978_v26, %v531_v25  ;;  %v999_v25 = vld [vmem:[%s1807_s15] ss:$0 sm:$0xff] }
 0x393   :  { %v532_v27 = vmul.f32 %v977_v22, %v524_v24 }
 0x395   :  { %v540_v29 = vadd.f32 %v978_v26, %v532_v27 }
 0x397   :  { %v557_v30 = vpack.c.bf16 %v540_v29, %v539_v28 }
 0x399   :  { %1139 = vmatmul.mubr.bf16.vlgmr.msra.gmra.mrb[4].mxu1 %v557_v30 }
 0x39a   :  { %1178 = vmatprep.mubr.msk.bf16.mxu1 %vm1449_vm0, %v1448_v0  ;;  %1163 = vmatpush3.bf16.msra.mxu1 %v1237_v57 }
 0x39b   :  { %1164 = vmatprep.subr.bf16.mxu1 %v1448_v0 }
 0x39e   :  { %1165 = vmatpush3.bf16.msra.mxu1 %v1238_v58 }
 0x39f   :  { %1166 = vmatprep.subr.bf16.mxu1 %v1448_v0 }
 0x3a2   :  { %1167 = vmatpush3.bf16.msra.mxu1 %v1239_v4 }
 0x3a3   :  { %1168 = vmatprep.subr.bf16.mxu1 %v1448_v0 }
 0x3a6   :  { %1169 = vmatpush3.bf16.msra.mxu1 %v1240_v5 }
 0x3a7   :  { %1170 = vmatprep.subr.bf16.mxu1 %v1448_v0 }
 0x3aa   :  { %1171 = vmatpush3.bf16.msra.mxu1 %v1241_v6 }
 0x3ab   :  { %1172 = vmatprep.subr.bf16.mxu1 %v1448_v0 }
 0x3ae   :  { %1173 = vmatpush3.bf16.msra.mxu1 %v1242_v7 }
 0x3af   :  { %1174 = vmatprep.subr.bf16.mxu1 %v1448_v0 }
 0x3b2   :  { %1175 = vmatpush3.bf16.msra.mxu1 %v1243_v41 }
 0x3b3   :  { %1176 = vmatprep.subr.bf16.mxu1 %v1448_v0  ;;  %v998_v0 = vld [vmem:[%s1801_s9] ss:$0 sm:$0xff] }
 0x3b6   :  { %1177 = vmatpush3.bf16.msra.mxu1 %v1244_v8 }
 0x46c   :  { %v647_v34 = vpop.f32.mrb[4].mxu1 }
 0x46d   :  { %v648_v35 = vadd.f32 %v979_v33, %v647_v34  ;;  %v1140_v36 = vpop.f32.mrb[5].mxu1 }
 0x46e   :  { %v650_v37 = vpop.f32.mrb[6].mxu1 }
 0x46f   :  { %v651_v38 = vadd.f32 %v979_v33, %v650_v37  ;;  %v1141_v39 = vpop.f32.mrb[7].mxu1  ;;  %v654_v40 = vmax.f32 %v648_v35, 0.0 }
 0x471   :  { %v655_v42 = vmax.f32 %v651_v38, 0.0 }
 0x473   :  { %v656_v43 = vpack.c.bf16 %v655_v42, %v654_v40 }
 0x475   :  { %1159 = vmatmul.mubr.bf16.vlgmr.msra.gmra.mrb[8].mxu0 %v656_v43 }
 0x548   :  { %v762_v45 = vpop.f32.mrb[8].mxu0 }
 0x549   :  { %v763_v46 = vadd.f32 %v988_v44, %v762_v45  ;;  %v1160_v48 = vpop.f32.mrb[9].mxu0 }
 0x54a   :  { %v765_v49 = vpop.f32.mrb[10].mxu0 }
 0x54b   :  { %v766_v51 = vadd.f32 %v988_v44, %v765_v49  ;;  %v1161_v52 = vpop.f32.mrb[11].mxu0  ;;  %v769_v53 = vadd.f32 %v763_v46, %v1709_v47 }
 0x54d   :  { %v773_v54 = vsel %vm152_vm1, %v769_v53, 0.0  ;;  %v770_v55 = vadd.f32 %v766_v51, %v1711_v50 }
 0x54e   :  { %775 = vadd.xlane.f32.xlu0 %v773_v54 }
 0x54f   :  { %v774_v56 = vsel %vm152_vm1, %v770_v55, 0.0 }
 0x550   :  { %777 = vadd.xlane.f32.xlu1 %v774_v56 }
 0x5db   :  { %v776_v59 = vpop.xlane.xlu0 %775 }
 0x5dc   :  { %v779_v47 = vmul.f32 0.03125, %v776_v59 }
 0x5dd   :  { %v778_v60 = vpop.xlane.xlu1 %777 }
 0x5de   :  { %v781_v61 = vsub.f32 %v769_v53, %v779_v47  ;;  %v780_v62 = vmul.f32 0.03125, %v778_v60 }
 0x5e0   :  { %v782_v63 = vsub.f32 %v770_v55, %v780_v62  ;;  %v783_v50 = vsel %vm152_vm1, %v781_v61, 0.0 }
 0x5e1   :  { %v785_v1 = vmul.f32 %v783_v50, %v783_v50 }
 0x5e2   :  { %v784_v2 = vsel %vm152_vm1, %v782_v63, 0.0 }
 0x5e3   :  { %787 = vadd.xlane.f32.xlu0 %v785_v1  ;;  %v786_v3 = vmul.f32 %v784_v2, %v784_v2 }
 0x5e5   :  { %789 = vadd.xlane.f32.xlu1 %v786_v3 }
 0x670   :  { %v788_v9 = vpop.xlane.xlu0 %787 }
 0x671   :  { %v791_v10 = vmul.f32 0.03125, %v788_v9 }
 0x672   :  { %v790_v11 = vpop.xlane.xlu1 %789 }
 0x673   :  { %v793_v12 = vadd.f32 1e-05, %v791_v10  ;;  %v792_v13 = vmul.f32 0.03125, %v790_v11 }
 0x675   :  { %1249 = vrsqrt.f32 %v793_v12  ;;  %v794_v14 = vadd.f32 1e-05, %v792_v13 }
 0x677   :  { %1251 = vrsqrt.f32 %v794_v14 }
 0x67f   :  { %v1250_v15 = vpop.eup %1249 }
 0x680   :  { %v797_v17 = vmul.f32 %v1250_v15, %v783_v50 }
 0x681   :  { %v1252_v18 = vpop.eup %1251 }
 0x682   :  { %v798_v19 = vmul.f32 %v1252_v18, %v784_v2  ;;  %v805_v20 = vmul.f32 %v997_v16, %v797_v17 }
 0x684   :  { %v806_v21 = vmul.f32 %v997_v16, %v798_v19  ;;  %v813_v22 = vadd.f32 %v998_v0, %v805_v20 }
 0x686   :  { %v814_v23 = vadd.f32 %v998_v0, %v806_v21 }
 0x688   :  { %v831_v24 = vpack.c.bf16 %v814_v23, %v813_v22 }
 0x68a   :  { %1179 = vmatmul.mubr.bf16.vlgmr.msra.gmra.mrb[8].mxu1 %v831_v24 }
 0x75d   :  { %v921_v26 = vpop.f32.mrb[8].mxu1 }
 0x75e   :  { %v922_v27 = vadd.f32 %v999_v25, %v921_v26  ;;  %v1180_v28 = vpop.f32.mrb[9].mxu1 }
 0x75f   :  { %v924_v29 = vpop.f32.mrb[10].mxu1 }
 0x760   :  { %928 = vst [vmem:[#allocation14] sm:$0xff] %v922_v27  ;;  %v925_v30 = vadd.f32 %v999_v25, %v924_v29  ;;  %v1181_v31 = vpop.f32.mrb[11].mxu1 }
 0x762   :  { %929 = vst [vmem:[#allocation14 + $0x8] sm:$0xff] %v925_v30 }
 0x763   :  { %1418 = shalt.err (!%p1415_p4)
}
 0x764   :  { %s1419_s30 = scalar_lea.hbm %s1808_s16, 256 }
 0x765   :  { %p1420_p5 = scmp.ne.s32.totalorder %s1808_s16, %s1419_s30  ;;  %p1423_p6 = scmp.lt.u32.totalorder %s1419_s30, %s1808_s16 }
 0x767   :  { %p1425_p7 = pnand %p1423_p6, %p1420_p5 }
 0x769   :  { %1428 = shalt.err (!%p1425_p7)
}
 0x76a   :  { %s1451_s10 = smov 128   ;;  %s1452_s1 = smov 8  }
 0x76b   :  { %941 = dma.vmem_to_hbm [thread:$0]  %s936_s21, 256, %s1808_s16, [#allocation4], %s1451_s10, %s1451_s10, %s1452_s1  }
 0x76c   :  { %1437 = dma.done.wait [#allocation4], 256  }
 0x76d   :  { %1438 = vsyncadd [#allocation4], 4294967040 }
 0x76e   :  { %945 = vsyncpa [#allocation3], 1 }
 0x76f   :  { %946 = vsyncpa [#allocation6], 1 }
 0x770   :  { %947 = vsyncpa [#allocation9], 1 }
 0x771   :  { %948 = vsyncpa [#allocation12], 1 }
 0x772   :  { %949 = vsyncpa [#allocation4], 1 }

// kernel: tpu_custom_call.1
= control target key start
LH: loop header
LB: loop body
LE: loop exit
PB: predicated region body
PF: predicated region fallthrough
CT: control target
= control target key end

     0   :  { %s1792_s0 = inlined_call_operand.hbm [shape: bf16[16,128], index: 0, kind: input, shape index: {}]   ;;  %s1793_s1 = inlined_call_operand.hbm [shape: bf16[128,128], index: 1, kind: input, shape index: {}]   ;;  %s1794_s2 = inlined_call_operand.vmem [shape: f32[1,128], index: 2, kind: input, shape index: {}]   ;;  %s1795_s3 = inlined_call_operand.hbm [shape: bf16[128,128], index: 3, kind: input, shape index: {}]   ;;  %s1796_s4 = inlined_call_operand.vmem [shape: f32[1,128], index: 4, kind: input, shape index: {}]   ;;  %s1797_s5 = inlined_call_operand.hbm [shape: bf16[128,128], index: 5, kind: input, shape index: {}]   ;;  %s1798_s6 = inlined_call_operand.vmem [shape: f32[1,128], index: 6, kind: input, shape index: {}]   ;;  %s1799_s7 = inlined_call_operand.vmem [shape: f32[1,128], index: 7, kind: input, shape index: {}]   ;;  %s1800_s8 = inlined_call_operand.vmem [shape: f32[1,128], index: 8, kind: input, shape index: {}]   ;;  %s1801_s9 = inlined_call_operand.vmem [shape: f32[1,128], index: 9, kind: input, shape index: {}]   ;;  %s1802_s10 = inlined_call_operand.hbm [shape: bf16[128,128], index: 10, kind: input, shape index: {}]   ;;  %s1803_s11 = inlined_call_operand.vmem [shape: f32[1,128], index: 11, kind: input, shape index: {}]   ;;  %s1804_s12 = inlined_call_operand.hbm [shape: bf16[128,128], index: 12, kind: input, shape index: {}]   ;;  %s1805_s13 = inlined_call_operand.vmem [shape: f32[1,128], index: 13, kind: input, shape index: {}]   ;;  %s1806_s14 = inlined_call_operand.hbm [shape: bf16[128,128], index: 14, kind: input, shape index: {}]   ;;  %s1807_s15 = inlined_call_operand.vmem [shape: f32[1,128], index: 15, kind: input, shape index: {}]   ;;  %s1808_s16 = inlined_call_operand.hbm [shape: f32[16,128], index: 16, kind: output, shape index: {}]  }
   0x1   :  { %1810 = sst [smem:[#allocation20_spill]] %s1792_s0 }
   0x2   :  { %21 = vsyncpa [#allocation3], 0 }
   0x3   :  { %22 = vsyncpa [#allocation6], 0 }
   0x4   :  { %23 = vsyncpa [#allocation9], 0 }
   0x5   :  { %24 = vsyncpa [#allocation12], 0 }
   0x6   :  { %25 = vsyncpa [#allocation4], 0  ;;  %s1439_s21 = smov [#allocation5]   ;;  %s1440_s23 = smov [#allocation8]  }
   0x7   :  { %s43_s22 = sshll.u32 %s1439_s21, 4  ;;  %s71_s24 = sshll.u32 %s1440_s23, 4  ;;  %s44_s22 = int_to_ptr.vmem [resolvable:$true] %s43_s22  ;;  %s1538_s24 = int_to_ptr.vmem [resolvable:$true] %s71_s24 }
   0x8   :  { %s1253_s27 = scalar_lea.hbm %s1793_s1, 1024 }
   0x9   :  { %p1254_p0 = scmp.ne.s32.totalorder %s1793_s1, %s1253_s27  ;;  %p1257_p1 = scmp.lt.u32.totalorder %s1253_s27, %s1793_s1 }
   0xb   :  { %p1259_p2 = pnand %p1257_p1, %p1254_p0 }
   0xd   :  { %1262 = shalt.err (!%p1259_p2)
}
   0xe   :  { %s1263_s17 = scalar_lea.vmem %s44_s22, 1024  ;;  %p1268_p4 = scmp.lt.s32.totalorder %s44_s22, %s44_s22 }
   0xf   :  { %p1264_p3 = scmp.ne.s32.totalorder %s44_s22, %s1263_s17  ;;  %p1269_p5 = scmp.lt.s32.totalorder %s1263_s17, %s1263_s17 }
  0x11   :  { %p1270_p6 = por %p1269_p5, %p1268_p4 }
  0x13   :  { %p1271_p7 = pnand %p1270_p6, %p1264_p3 }
  0x15   :  { %1274 = shalt.err (!%p1271_p7)
}
  0x16   :  { %s1441_s18 = smov 64   ;;  %s1442_s19 = smov 4  }
  0x17   :  { %49 = dma.hbm_to_vmem [thread:$0]  %s1793_s1, 1024, %s44_s22, [#allocation6], %s1441_s18, %s1441_s18, %s1442_s19  }
  0x18   :  { %s1275_s26 = scalar_lea.hbm %s1797_s5, 1024 }
  0x19   :  { %p1276_p8 = scmp.ne.s32.totalorder %s1797_s5, %s1275_s26  ;;  %p1279_p9 = scmp.lt.u32.totalorder %s1275_s26, %s1797_s5 }
  0x1b   :  { %p1281_p10 = pnand %p1279_p9, %p1276_p8 }
  0x1d   :  { %1284 = shalt.err (!%p1281_p10)
}
  0x1e   :  { %s1285_s0 = scalar_lea.vmem %s1538_s24, 1024  ;;  %p1290_p12 = scmp.lt.s32.totalorder %s1538_s24, %s1538_s24 }
  0x1f   :  { %p1286_p11 = scmp.ne.s32.totalorder %s1538_s24, %s1285_s0  ;;  %p1291_p13 = scmp.lt.s32.totalorder %s1285_s0, %s1285_s0 }
  0x21   :  { %p1292_p0 = por %p1291_p13, %p1290_p12 }
  0x23   :  { %p1293_p1 = pnand %p1292_p0, %p1286_p11 }
  0x25   :  { %1296 = shalt.err (!%p1293_p1)
}
  0x26   :  { %77 = dma.hbm_to_vmem [thread:$0]  %s1797_s5, 1024, %s1538_s24, [#allocation9], %s1441_s18, %s1441_s18, %s1442_s19  }
  0x27   :  { %s1443_s17 = smov [#allocation11]   ;;  %s1444_s21 = smov [#allocation2]  }
  0x28   :  { %s105_s20 = sshll.u32 %s1443_s17, 4  ;;  %s31_s23 = sshll.u32 %s1444_s21, 4  ;;  %s106_s20 = int_to_ptr.vmem [resolvable:$true] %s105_s20  ;;  %s1575_s23 = int_to_ptr.vmem [resolvable:$true] %s31_s23 }
  0x29   :  { %s1297_s27 = scalar_lea.hbm %s1804_s12, 1024 }
  0x2a   :  { %p1298_p2 = scmp.ne.s32.totalorder %s1804_s12, %s1297_s27  ;;  %p1301_p3 = scmp.lt.u32.totalorder %s1297_s27, %s1804_s12 }
  0x2c   :  { %p1303_p4 = pnand %p1301_p3, %p1298_p2 }
  0x2e   :  { %1306 = shalt.err (!%p1303_p4)
}
  0x2f   :  { %s1307_s5 = scalar_lea.vmem %s106_s20, 1024  ;;  %p1312_p6 = scmp.lt.s32.totalorder %s106_s20, %s106_s20 }
  0x30   :  { %p1308_p5 = scmp.ne.s32.totalorder %s106_s20, %s1307_s5  ;;  %p1313_p7 = scmp.lt.s32.totalorder %s1307_s5, %s1307_s5 }
  0x32   :  { %p1314_p8 = por %p1313_p7, %p1312_p6 }
  0x34   :  { %p1315_p9 = pnand %p1314_p8, %p1308_p5 }
  0x36   :  { %1318 = shalt.err (!%p1315_p9)
}
  0x37   :  { %111 = dma.hbm_to_vmem [thread:$0]  %s1804_s12, 1024, %s106_s20, [#allocation12], %s1441_s18, %s1441_s18, %s1442_s19  }
  0x38   :  { %s1811_s21 = sld [smem:[#allocation20_spill]] }
  0x3e   :  { %s1319_s25 = scalar_lea.hbm %s1811_s21, 128 }
  0x3f   :  { %p1320_p10 = scmp.ne.s32.totalorder %s1811_s21, %s1319_s25  ;;  %p1323_p11 = scmp.lt.u32.totalorder %s1319_s25, %s1811_s21 }
  0x41   :  { %p1325_p12 = pnand %p1323_p11, %p1320_p10 }
  0x43   :  { %1328 = shalt.err (!%p1325_p12)
}
  0x44   :  { %s1329_s30 = scalar_lea.vmem %s1575_s23, 128  ;;  %p1334_p0 = scmp.lt.s32.totalorder %s1575_s23, %s1575_s23 }
  0x45   :  { %p1330_p13 = scmp.ne.s32.totalorder %s1575_s23, %s1329_s30  ;;  %p1335_p1 = scmp.lt.s32.totalorder %s1329_s30, %s1329_s30 }
  0x47   :  { %p1336_p2 = por %p1335_p1, %p1334_p0 }
  0x49   :  { %p1337_p3 = pnand %p1336_p2, %p1330_p13 }
  0x4b   :  { %1340 = shalt.err (!%p1337_p3)
}
  0x4c   :  { %37 = dma.hbm_to_vmem [thread:$0]  %s1811_s21, 128, %s1575_s23, [#allocation3], %s1441_s18, %s1441_s18, %s1442_s19  }
  0x4d   :  { %s1445_s0 = smov [#allocation7]   ;;  %s1446_s24 = smov [#allocation10]  }
  0x4e   :  { %s57_s5 = sshll.u32 %s1445_s0, 4  ;;  %s91_s1 = sshll.u32 %s1446_s24, 4  ;;  %s58_s5 = int_to_ptr.vmem [resolvable:$true] %s57_s5  ;;  %s1612_s1 = int_to_ptr.vmem [resolvable:$true] %s91_s1 }
  0x4f   :  { %s1341_s25 = scalar_lea.hbm %s1795_s3, 1024 }
  0x50   :  { %p1342_p4 = scmp.ne.s32.totalorder %s1795_s3, %s1341_s25  ;;  %p1345_p5 = scmp.lt.u32.totalorder %s1341_s25, %s1795_s3 }
  0x52   :  { %p1347_p6 = pnand %p1345_p5, %p1342_p4 }
  0x54   :  { %1350 = shalt.err (!%p1347_p6)
}
  0x55   :  { %s1351_s23 = scalar_lea.vmem %s58_s5, 1024  ;;  %p1356_p8 = scmp.lt.s32.totalorder %s58_s5, %s58_s5 }
  0x56   :  { %p1352_p7 = scmp.ne.s32.totalorder %s58_s5, %s1351_s23  ;;  %p1357_p9 = scmp.lt.s32.totalorder %s1351_s23, %s1351_s23 }
  0x58   :  { %p1358_p10 = por %p1357_p9, %p1356_p8 }
  0x5a   :  { %p1359_p11 = pnand %p1358_p10, %p1352_p7 }
  0x5c   :  { %1362 = shalt.err (!%p1359_p11)
}
  0x5d   :  { %63 = dma.hbm_to_vmem [thread:$0]  %s1795_s3, 1024, %s58_s5, [#allocation6], %s1441_s18, %s1441_s18, %s1442_s19  }
  0x5e   :  { %s1363_s0 = scalar_lea.hbm %s1802_s10, 1024 }
  0x5f   :  { %p1364_p12 = scmp.ne.s32.totalorder %s1802_s10, %s1363_s0  ;;  %p1367_p13 = scmp.lt.u32.totalorder %s1363_s0, %s1802_s10 }
  0x61   :  { %p1369_p0 = pnand %p1367_p13, %p1364_p12 }
  0x63   :  { %1372 = shalt.err (!%p1369_p0)
}
  0x64   :  { %s1373_s26 = scalar_lea.vmem %s1612_s1, 1024  ;;  %p1378_p2 = scmp.lt.s32.totalorder %s1612_s1, %s1612_s1 }
  0x65   :  { %p1374_p1 = scmp.ne.s32.totalorder %s1612_s1, %s1373_s26  ;;  %p1379_p3 = scmp.lt.s32.totalorder %s1373_s26, %s1373_s26 }
  0x67   :  { %p1380_p4 = por %p1379_p3, %p1378_p2 }
  0x69   :  { %p1381_p5 = pnand %p1380_p4, %p1374_p1 }
  0x6b   :  { %1384 = shalt.err (!%p1381_p5)
}
  0x6c   :  { %97 = dma.hbm_to_vmem [thread:$0]  %s1802_s10, 1024, %s1612_s1, [#allocation9], %s1441_s18, %s1441_s18, %s1442_s19  }
  0x6d   :  { %s1447_s27 = smov [#allocation13]   ;;  %s1385_s21 = scalar_lea.hbm %s1806_s14, 1024 }
  0x6e   :  { %s119_s28 = sshll.u32 %s1447_s27, 4  ;;  %p1386_p6 = scmp.ne.s32.totalorder %s1806_s14, %s1385_s21  ;;  %s120_s28 = int_to_ptr.vmem [resolvable:$true] %s119_s28 }
  0x6f   :  { %p1389_p7 = scmp.lt.u32.totalorder %s1385_s21, %s1806_s14 }
  0x71   :  { %p1391_p8 = pnand %p1389_p7, %p1386_p6 }
  0x73   :  { %1394 = shalt.err (!%p1391_p8)
}
  0x74   :  { %s1395_s24 = scalar_lea.vmem %s120_s28, 1024  ;;  %p1400_p10 = scmp.lt.s32.totalorder %s120_s28, %s120_s28 }
  0x75   :  { %p1396_p9 = scmp.ne.s32.totalorder %s120_s28, %s1395_s24  ;;  %p1401_p11 = scmp.lt.s32.totalorder %s1395_s24, %s1395_s24 }
  0x77   :  { %p1402_p12 = por %p1401_p11, %p1400_p10 }
  0x79   :  { %p1403_p13 = pnand %p1402_p12, %p1396_p9 }
  0x7b   :  { %1406 = shalt.err (!%p1403_p13)
}
  0x7c   :  { %125 = dma.hbm_to_vmem [thread:$0]  %s1806_s14, 1024, %s120_s28, [#allocation12], %s1441_s18, %s1441_s18, %s1442_s19  }
  0x7d   :  { %1429 = dma.done.wait [#allocation3], 128  }
  0x7e   :  { %1430 = vsyncadd [#allocation3], 4294967168 }
  0x7f   :  { %1431 = dma.done.wait [#allocation6], 2048  }
  0x80   :  { %1432 = vsyncadd [#allocation6], 4294965248 }
  0x81   :  { %1433 = dma.done.wait [#allocation9], 2048  }
  0x82   :  { %1434 = vsyncadd [#allocation9], 4294965248 }
  0x83   :  { %1435 = dma.done.wait [#allocation12], 2048  }
  0x84   :  { %1436 = vsyncadd [#allocation12], 4294965248  ;;  %v1448_v0 = vmov 0.0   ;;  %vm1449_vm0 = vmmov 0   ;;  %v1196_v1 = vld [vmem:[#allocation5] sm:$0xff]   ;;  %v1197_v2 = vld [vmem:[#allocation5 + $0x8] sm:$0xff]   ;;  %v150_v40 = vlaneseq }
  0x85   :  { %1062 = vmatprep.subr.bf16.mxu0 %v1448_v0  ;;  %1078 = vmatprep.mubr.msk.bf16.mxu0 %vm1449_vm0, %v1448_v0  ;;  %v1198_v3 = vld [vmem:[#allocation5 + $0x10] sm:$0xff]   ;;  %v1199_v4 = vld [vmem:[#allocation5 + $0x18] sm:$0xff]   ;;  %v1206_v5 = vld [vmem:[#allocation8] sm:$0xff]   ;;  %s1450_s23 = smov [#allocation14]  }
  0x86   :  { %1082 = vmatprep.subr.bf16.mxu1 %v1448_v0  ;;  %1098 = vmatprep.mubr.msk.bf16.mxu1 %vm1449_vm0, %v1448_v0  ;;  %v1208_v6 = vld [vmem:[#allocation8 + $0x8] sm:$0xff]   ;;  %v1200_v7 = vld [vmem:[#allocation5 + $0x20] sm:$0xff]   ;;  %v1210_v8 = vld [vmem:[#allocation8 + $0x10] sm:$0xff]   ;;  %v1703_v41 = vand.u32 127, %v150_v40  ;;  %s935_s21 = sshll.u32 %s1450_s23, 4  ;;  %s936_s21 = int_to_ptr.vmem [resolvable:$true] %s935_s21 }
  0x87   :  { %1063 = vmatpush3.bf16.msra.mxu0 %v1196_v1  ;;  %1083 = vmatpush3.bf16.msra.mxu1 %v1206_v5  ;;  %v1201_v9 = vld [vmem:[#allocation5 + $0x28] sm:$0xff]   ;;  %v1212_v10 = vld [vmem:[#allocation8 + $0x18] sm:$0xff]   ;;  %v1202_v11 = vld [vmem:[#allocation5 + $0x30] sm:$0xff]   ;;  %p1412_p1 = scmp.lt.s32.totalorder %s936_s21, %s936_s21 }
  0x88   :  { %1064 = vmatprep.subr.bf16.mxu0 %v1448_v0  ;;  %1084 = vmatprep.subr.bf16.mxu1 %v1448_v0  ;;  %v1214_v12 = vld [vmem:[#allocation8 + $0x20] sm:$0xff]   ;;  %v1203_v13 = vld [vmem:[#allocation5 + $0x38] sm:$0xff]   ;;  %v1216_v14 = vld [vmem:[#allocation8 + $0x28] sm:$0xff]   ;;  %vm152_vm1 = vcmp.lt.s32.totalorder %v1703_v41, 32 }
  0x89   :  { %v1204_v15 = vld [vmem:[#allocation2] sm:$0xff]   ;;  %v1205_v16 = vld [vmem:[#allocation7] sm:$0xff]   ;;  %v1207_v17 = vld [vmem:[#allocation7 + $0x8] sm:$0xff]  }
  0x8a   :  { %v1209_v18 = vld [vmem:[#allocation7 + $0x10] sm:$0xff]   ;;  %v1211_v19 = vld [vmem:[#allocation7 + $0x18] sm:$0xff]   ;;  %v1213_v20 = vld [vmem:[#allocation7 + $0x20] sm:$0xff]  }
  0x8b   :  { %1065 = vmatpush3.bf16.msra.mxu0 %v1197_v2  ;;  %1085 = vmatpush3.bf16.msra.mxu1 %v1208_v6  ;;  %v1215_v21 = vld [vmem:[#allocation7 + $0x28] sm:$0xff]   ;;  %v1217_v22 = vld [vmem:[#allocation7 + $0x30] sm:$0xff]   ;;  %v1219_v24 = vld [vmem:[#allocation7 + $0x38] sm:$0xff]  }
  0x8c   :  { %1066 = vmatprep.subr.bf16.mxu0 %v1448_v0  ;;  %1086 = vmatprep.subr.bf16.mxu1 %v1448_v0  ;;  %v1218_v23 = vld [vmem:[#allocation8 + $0x30] sm:$0xff]   ;;  %v1220_v25 = vld [vmem:[#allocation8 + $0x38] sm:$0xff]   ;;  %v1221_v53 = vld [vmem:[#allocation10] sm:$0xff]  }
  0x8d   :  { %v950_v26 = vld [vmem:[%s1794_s2] ss:$0 sm:$0xff]  ;;  %v1222_v1 = vld [vmem:[#allocation10 + $0x8] sm:$0xff]   ;;  %v1223_v2 = vld [vmem:[#allocation10 + $0x10] sm:$0xff]  }
  0x8e   :  { %v976_v43 = vld [vmem:[%s1796_s4] ss:$0 sm:$0xff]  ;;  %v1226_v5 = vld [vmem:[#allocation10 + $0x28] sm:$0xff]   ;;  %v1227_v6 = vld [vmem:[#allocation10 + $0x30] sm:$0xff]  }
  0x8f   :  { %1067 = vmatpush3.bf16.msra.mxu0 %v1198_v3  ;;  %1087 = vmatpush3.bf16.msra.mxu1 %v1210_v8  ;;  %v1224_v3 = vld [vmem:[#allocation10 + $0x18] sm:$0xff]   ;;  %v1229_v8 = vld [vmem:[#allocation11] sm:$0xff]   ;;  %v1243_v41 = vld [vmem:[#allocation13 + $0x30] sm:$0xff]  }
  0x90   :  { %1068 = vmatprep.subr.bf16.mxu0 %v1448_v0  ;;  %1088 = vmatprep.subr.bf16.mxu1 %v1448_v0 }
  0x93   :  { %1069 = vmatpush3.bf16.msra.mxu0 %v1199_v4  ;;  %1089 = vmatpush3.bf16.msra.mxu1 %v1212_v10  ;;  %v1225_v4 = vld [vmem:[#allocation10 + $0x20] sm:$0xff]   ;;  %v1231_v10 = vld [vmem:[#allocation11 + $0x10] sm:$0xff]  }
  0x94   :  { %1070 = vmatprep.subr.bf16.mxu0 %v1448_v0  ;;  %1090 = vmatprep.subr.bf16.mxu1 %v1448_v0 }
  0x97   :  { %1071 = vmatpush3.bf16.msra.mxu0 %v1200_v7  ;;  %1091 = vmatpush3.bf16.msra.mxu1 %v1214_v12  ;;  %v1228_v7 = vld [vmem:[#allocation10 + $0x38] sm:$0xff]   ;;  %v1233_v12 = vld [vmem:[#allocation11 + $0x20] sm:$0xff]  }
  0x98   :  { %1072 = vmatprep.subr.bf16.mxu0 %v1448_v0  ;;  %1092 = vmatprep.subr.bf16.mxu1 %v1448_v0 }
  0x9b   :  { %1073 = vmatpush3.bf16.msra.mxu0 %v1201_v9  ;;  %1093 = vmatpush3.bf16.msra.mxu1 %v1216_v14  ;;  %v1230_v9 = vld [vmem:[#allocation11 + $0x8] sm:$0xff]  }
  0x9c   :  { %1074 = vmatprep.subr.bf16.mxu0 %v1448_v0  ;;  %1094 = vmatprep.subr.bf16.mxu1 %v1448_v0 }
  0x9f   :  { %1075 = vmatpush3.bf16.msra.mxu0 %v1202_v11  ;;  %1095 = vmatpush3.bf16.msra.mxu1 %v1218_v23  ;;  %v1232_v11 = vld [vmem:[#allocation11 + $0x18] sm:$0xff]  }
  0xa0   :  { %1076 = vmatprep.subr.bf16.mxu0 %v1448_v0  ;;  %1096 = vmatprep.subr.bf16.mxu1 %v1448_v0 }
  0xa3   :  { %1077 = vmatpush3.bf16.msra.mxu0 %v1203_v13  ;;  %1097 = vmatpush3.bf16.msra.mxu1 %v1220_v25  ;;  %v1234_v13 = vld [vmem:[#allocation11 + $0x28] sm:$0xff]  }
  0xa4   :  { %1102 = vmatprep.subr.bf16.mxu0 %v1448_v0  ;;  %1122 = vmatprep.subr.bf16.mxu1 %v1448_v0 }
  0xa6   :  { %1079 = vmatmul.mubr.bf16.vlgmr.msra.gmra.mrb[0].mxu0 %v1204_v15 }
  0xa7   :  { %1103 = vmatpush3.bf16.msra.mxu0 %v1205_v16  ;;  %1118 = vmatprep.mubr.msk.bf16.mxu0 %vm1449_vm0, %v1448_v0 }
  0xa8   :  { %1104 = vmatprep.subr.bf16.mxu0 %v1448_v0 }
  0xab   :  { %1105 = vmatpush3.bf16.msra.mxu0 %v1207_v17 }
  0xac   :  { %1106 = vmatprep.subr.bf16.mxu0 %v1448_v0 }
  0xaf   :  { %1107 = vmatpush3.bf16.msra.mxu0 %v1209_v18 }
  0xb0   :  { %1108 = vmatprep.subr.bf16.mxu0 %v1448_v0 }
  0xb3   :  { %1109 = vmatpush3.bf16.msra.mxu0 %v1211_v19 }
  0xb4   :  { %1110 = vmatprep.subr.bf16.mxu0 %v1448_v0 }
  0xb7   :  { %1111 = vmatpush3.bf16.msra.mxu0 %v1213_v20 }
  0xb8   :  { %1112 = vmatprep.subr.bf16.mxu0 %v1448_v0 }
  0xbb   :  { %1113 = vmatpush3.bf16.msra.mxu0 %v1215_v21 }
  0xbc   :  { %1114 = vmatprep.subr.bf16.mxu0 %v1448_v0 }
  0xbf   :  { %1115 = vmatpush3.bf16.msra.mxu0 %v1217_v22  ;;  %v977_v22 = vld [vmem:[%s1798_s6] ss:$0 sm:$0xff] }
  0xc0   :  { %1116 = vmatprep.subr.bf16.mxu0 %v1448_v0 }
  0xc3   :  { %1117 = vmatpush3.bf16.msra.mxu0 %v1219_v24 }
  0xc4   :  { %1142 = vmatprep.subr.bf16.mxu0 %v1448_v0 }
  0xc6   :  { %1119 = vmatmul.mubr.bf16.vlgmr.msra.gmra.mrb[4].mxu0 %v1204_v15 }
  0xc7   :  { %1158 = vmatprep.mubr.msk.bf16.mxu0 %vm1449_vm0, %v1448_v0  ;;  %1143 = vmatpush3.bf16.msra.mxu0 %v1229_v8  ;;  %v1244_v8 = vld [vmem:[#allocation13 + $0x38] sm:$0xff]  }
  0xc8   :  { %1144 = vmatprep.subr.bf16.mxu0 %v1448_v0 }
  0xcb   :  { %1145 = vmatpush3.bf16.msra.mxu0 %v1230_v9 }
  0xcc   :  { %1146 = vmatprep.subr.bf16.mxu0 %v1448_v0 }
  0xcf   :  { %1147 = vmatpush3.bf16.msra.mxu0 %v1231_v10 }
  0xd0   :  { %1148 = vmatprep.subr.bf16.mxu0 %v1448_v0 }
  0xd3   :  { %1149 = vmatpush3.bf16.msra.mxu0 %v1232_v11 }
  0xd4   :  { %1150 = vmatprep.subr.bf16.mxu0 %v1448_v0 }
  0xd7   :  { %1151 = vmatpush3.bf16.msra.mxu0 %v1233_v12 }
  0xd8   :  { %1152 = vmatprep.subr.bf16.mxu0 %v1448_v0 }
  0xdb   :  { %1153 = vmatpush3.bf16.msra.mxu0 %v1234_v13 }
  0xdc   :  { %1154 = vmatprep.subr.bf16.mxu0 %v1448_v0 }
 0x179   :  { %v266_v27 = vpop.f32.mrb[0].mxu0 }
 0x17a   :  { %v267_v28 = vadd.f32 %v950_v26, %v266_v27  ;;  %v1080_v29 = vpop.f32.mrb[1].mxu0 }
 0x17b   :  { %v269_v30 = vpop.f32.mrb[2].mxu0 }
 0x17c   :  { %v270_v31 = vadd.f32 %v950_v26, %v269_v30  ;;  %v1081_v32 = vpop.f32.mrb[3].mxu0  ;;  %v273_v33 = vmax.f32 %v267_v28, 0.0  ;;  %v978_v26 = vld [vmem:[%s1799_s7] ss:$0 sm:$0xff] }
 0x17d   :  { %v1236_v32 = vld [vmem:[#allocation11 + $0x38] sm:$0xff]  }
 0x17e   :  { %v274_v34 = vmax.f32 %v270_v31, 0.0  ;;  %v1235_v31 = vld [vmem:[#allocation11 + $0x30] sm:$0xff]  }
 0x17f   :  { %1155 = vmatpush3.bf16.msra.mxu0 %v1235_v31 }
 0x180   :  { %v275_v35 = vpack.c.bf16 %v274_v34, %v273_v33  ;;  %1156 = vmatprep.subr.bf16.mxu0 %v1448_v0  ;;  %v979_v33 = vld [vmem:[%s1803_s11] ss:$0 sm:$0xff] }
 0x182   :  { %1099 = vmatmul.mubr.bf16.vlgmr.msra.gmra.mrb[0].mxu1 %v275_v35 }
 0x183   :  { %1138 = vmatprep.mubr.msk.bf16.mxu1 %vm1449_vm0, %v1448_v0  ;;  %1123 = vmatpush3.bf16.msra.mxu1 %v1221_v53 }
 0x184   :  { %1124 = vmatprep.subr.bf16.mxu1 %v1448_v0  ;;  %1157 = vmatpush3.bf16.msra.mxu0 %v1236_v32 }
 0x187   :  { %1125 = vmatpush3.bf16.msra.mxu1 %v1222_v1 }
 0x188   :  { %1126 = vmatprep.subr.bf16.mxu1 %v1448_v0 }
 0x18b   :  { %1127 = vmatpush3.bf16.msra.mxu1 %v1223_v2 }
 0x18c   :  { %1128 = vmatprep.subr.bf16.mxu1 %v1448_v0 }
 0x18f   :  { %1129 = vmatpush3.bf16.msra.mxu1 %v1224_v3 }
 0x190   :  { %1130 = vmatprep.subr.bf16.mxu1 %v1448_v0 }
 0x193   :  { %1131 = vmatpush3.bf16.msra.mxu1 %v1225_v4  ;;  %v1239_v4 = vld [vmem:[#allocation13 + $0x10] sm:$0xff]  }
 0x194   :  { %1132 = vmatprep.subr.bf16.mxu1 %v1448_v0 }
 0x197   :  { %1133 = vmatpush3.bf16.msra.mxu1 %v1226_v5  ;;  %v1240_v5 = vld [vmem:[#allocation13 + $0x18] sm:$0xff]  }
 0x198   :  { %1134 = vmatprep.subr.bf16.mxu1 %v1448_v0 }
 0x199   :  { %v479_v36 = vpop.f32.mrb[4].mxu0 }
 0x19a   :  { %v1120_v37 = vpop.f32.mrb[5].mxu0 }
 0x19b   :  { %v482_v38 = vpop.f32.mrb[6].mxu0  ;;  %1135 = vmatpush3.bf16.msra.mxu1 %v1227_v6  ;;  %v1241_v6 = vld [vmem:[#allocation13 + $0x20] sm:$0xff]  }
 0x19c   :  { %v1121_v39 = vpop.f32.mrb[7].mxu0  ;;  %1136 = vmatprep.subr.bf16.mxu1 %v1448_v0 }
 0x19f   :  { %1137 = vmatpush3.bf16.msra.mxu1 %v1228_v7  ;;  %v1242_v7 = vld [vmem:[#allocation13 + $0x28] sm:$0xff]  }
 0x1a0   :  { %1162 = vmatprep.subr.bf16.mxu1 %v1448_v0 }
 0x255   :  { %v390_v42 = vpop.f32.mrb[0].mxu1 }
 0x256   :  { %v480_v44 = vadd.f32 %v479_v36, %v390_v42  ;;  %v1100_v45 = vpop.f32.mrb[1].mxu1 }
 0x257   :  { %v393_v46 = vpop.f32.mrb[2].mxu1 }
 0x258   :  { %v1709_v47 = vadd.f32 %v976_v43, %v480_v44  ;;  %v483_v48 = vadd.f32 %v482_v38, %v393_v46  ;;  %v1101_v49 = vpop.f32.mrb[3].mxu1  ;;  %v988_v44 = vld [vmem:[%s1805_s13] ss:$0 sm:$0xff] }
 0x25a   :  { %v1711_v50 = vadd.f32 %v976_v43, %v483_v48  ;;  %v499_v51 = vsel %vm152_vm1, %v1709_v47, 0.0 }
 0x25b   :  { %501 = vadd.xlane.f32.xlu0 %v499_v51 }
 0x25c   :  { %v500_v52 = vsel %vm152_vm1, %v1711_v50, 0.0 }
 0x25f   :  { %503 = vadd.xlane.f32.xlu0 %v500_v52 }
 0x2e8   :  { %v502_v54 = vpop.xlane.xlu0 %501 }
 0x2e9   :  { %v505_v55 = vmul.f32 0.03125, %v502_v54 }
 0x2eb   :  { %v507_v56 = vsub.f32 %v1709_v47, %v505_v55 }
 0x2ec   :  { %v504_v57 = vpop.xlane.xlu0 %503 }
 0x2ed   :  { %v506_v58 = vmul.f32 0.03125, %v504_v57  ;;  %v509_v59 = vsel %vm152_vm1, %v507_v56, 0.0  ;;  %v1237_v57 = vld [vmem:[#allocation13] sm:$0xff]  }
 0x2ee   :  { %v511_v60 = vmul.f32 %v509_v59, %v509_v59 }
 0x2ef   :  { %v508_v61 = vsub.f32 %v1711_v50, %v506_v58  ;;  %v1238_v58 = vld [vmem:[#allocation13 + $0x8] sm:$0xff]  }
 0x2f0   :  { %513 = vadd.xlane.f32.xlu1 %v511_v60 }
 0x2f1   :  { %v510_v62 = vsel %vm152_vm1, %v508_v61, 0.0 }
 0x2f2   :  { %v512_v63 = vmul.f32 %v510_v62, %v510_v62 }
 0x2f4   :  { %515 = vadd.xlane.f32.xlu1 %v512_v63 }
 0x37d   :  { %v514_v14 = vpop.xlane.xlu1 %513 }
 0x37e   :  { %v517_v15 = vmul.f32 0.03125, %v514_v14 }
 0x380   :  { %v519_v16 = vadd.f32 1e-05, %v517_v15 }
 0x381   :  { %v516_v17 = vpop.xlane.xlu1 %515 }
 0x382   :  { %1245 = vrsqrt.f32 %v519_v16  ;;  %v518_v18 = vmul.f32 0.03125, %v516_v17  ;;  %v997_v16 = vld [vmem:[%s1800_s8] ss:$0 sm:$0xff]  ;;  %s1407_s8 = scalar_lea.vmem %s936_s21, 256 }
 0x383   :  { %p1408_p0 = scmp.ne.s32.totalorder %s936_s21, %s1407_s8  ;;  %p1413_p2 = scmp.lt.s32.totalorder %s1407_s8, %s1407_s8 }
 0x384   :  { %v520_v19 = vadd.f32 1e-05, %v518_v18 }
 0x385   :  { %p1414_p3 = por %p1413_p2, %p1412_p1 }
 0x386   :  { %1247 = vrsqrt.f32 %v520_v19 }
 0x387   :  { %p1415_p4 = pnand %p1414_p3, %p1408_p0 }
 0x38c   :  { %v1246_v20 = vpop.eup %1245 }
 0x38d   :  { %v523_v21 = vmul.f32 %v1246_v20, %v509_v59 }
 0x38f   :  { %v531_v25 = vmul.f32 %v977_v22, %v523_v21 }
 0x390   :  { %v1248_v23 = vpop.eup %1247 }
 0x391   :  { %v524_v24 = vmul.f32 %v1248_v23, %v510_v62  ;;  %v539_v28 = vadd.f32 %v978_v26, %v531_v25  ;;  %v999_v25 = vld [vmem:[%s1807_s15] ss:$0 sm:$0xff] }
 0x393   :  { %v532_v27 = vmul.f32 %v977_v22, %v524_v24 }
 0x395   :  { %v540_v29 = vadd.f32 %v978_v26, %v532_v27 }
 0x397   :  { %v557_v30 = vpack.c.bf16 %v540_v29, %v539_v28 }
 0x399   :  { %1139 = vmatmul.mubr.bf16.vlgmr.msra.gmra.mrb[4].mxu1 %v557_v30 }
 0x39a   :  { %1178 = vmatprep.mubr.msk.bf16.mxu1 %vm1449_vm0, %v1448_v0  ;;  %1163 = vmatpush3.bf16.msra.mxu1 %v1237_v57 }
 0x39b   :  { %1164 = vmatprep.subr.bf16.mxu1 %v1448_v0 }
 0x39e   :  { %1165 = vmatpush3.bf16.msra.mxu1 %v1238_v58 }
 0x39f   :  { %1166 = vmatprep.subr.bf16.mxu1 %v1448_v0 }
 0x3a2   :  { %1167 = vmatpush3.bf16.msra.mxu1 %v1239_v4 }
 0x3a3   :  { %1168 = vmatprep.subr.bf16.mxu1 %v1448_v0 }
 0x3a6   :  { %1169 = vmatpush3.bf16.msra.mxu1 %v1240_v5 }
 0x3a7   :  { %1170 = vmatprep.subr.bf16.mxu1 %v1448_v0 }
 0x3aa   :  { %1171 = vmatpush3.bf16.msra.mxu1 %v1241_v6 }
 0x3ab   :  { %1172 = vmatprep.subr.bf16.mxu1 %v1448_v0 }
 0x3ae   :  { %1173 = vmatpush3.bf16.msra.mxu1 %v1242_v7 }
 0x3af   :  { %1174 = vmatprep.subr.bf16.mxu1 %v1448_v0 }
 0x3b2   :  { %1175 = vmatpush3.bf16.msra.mxu1 %v1243_v41 }
 0x3b3   :  { %1176 = vmatprep.subr.bf16.mxu1 %v1448_v0  ;;  %v998_v0 = vld [vmem:[%s1801_s9] ss:$0 sm:$0xff] }
 0x3b6   :  { %1177 = vmatpush3.bf16.msra.mxu1 %v1244_v8 }
 0x46c   :  { %v647_v34 = vpop.f32.mrb[4].mxu1 }
 0x46d   :  { %v648_v35 = vadd.f32 %v979_v33, %v647_v34  ;;  %v1140_v36 = vpop.f32.mrb[5].mxu1 }
 0x46e   :  { %v650_v37 = vpop.f32.mrb[6].mxu1 }
 0x46f   :  { %v651_v38 = vadd.f32 %v979_v33, %v650_v37  ;;  %v1141_v39 = vpop.f32.mrb[7].mxu1  ;;  %v654_v40 = vmax.f32 %v648_v35, 0.0 }
 0x471   :  { %v655_v42 = vmax.f32 %v651_v38, 0.0 }
 0x473   :  { %v656_v43 = vpack.c.bf16 %v655_v42, %v654_v40 }
 0x475   :  { %1159 = vmatmul.mubr.bf16.vlgmr.msra.gmra.mrb[8].mxu0 %v656_v43 }
 0x548   :  { %v762_v45 = vpop.f32.mrb[8].mxu0 }
 0x549   :  { %v763_v46 = vadd.f32 %v988_v44, %v762_v45  ;;  %v1160_v48 = vpop.f32.mrb[9].mxu0 }
 0x54a   :  { %v765_v49 = vpop.f32.mrb[10].mxu0 }
 0x54b   :  { %v766_v51 = vadd.f32 %v988_v44, %v765_v49  ;;  %v1161_v52 = vpop.f32.mrb[11].mxu0  ;;  %v769_v53 = vadd.f32 %v763_v46, %v1709_v47 }
 0x54d   :  { %v773_v54 = vsel %vm152_vm1, %v769_v53, 0.0  ;;  %v770_v55 = vadd.f32 %v766_v51, %v1711_v50 }
 0x54e   :  { %775 = vadd.xlane.f32.xlu0 %v773_v54 }
 0x54f   :  { %v774_v56 = vsel %vm152_vm1, %v770_v55, 0.0 }
 0x550   :  { %777 = vadd.xlane.f32.xlu1 %v774_v56 }
 0x5db   :  { %v776_v59 = vpop.xlane.xlu0 %775 }
 0x5dc   :  { %v779_v47 = vmul.f32 0.03125, %v776_v59 }
 0x5dd   :  { %v778_v60 = vpop.xlane.xlu1 %777 }
 0x5de   :  { %v781_v61 = vsub.f32 %v769_v53, %v779_v47  ;;  %v780_v62 = vmul.f32 0.03125, %v778_v60 }
 0x5e0   :  { %v782_v63 = vsub.f32 %v770_v55, %v780_v62  ;;  %v783_v50 = vsel %vm152_vm1, %v781_v61, 0.0 }
 0x5e1   :  { %v785_v1 = vmul.f32 %v783_v50, %v783_v50 }
 0x5e2   :  { %v784_v2 = vsel %vm152_vm1, %v782_v63, 0.0 }
 0x5e3   :  { %787 = vadd.xlane.f32.xlu0 %v785_v1  ;;  %v786_v3 = vmul.f32 %v784_v2, %v784_v2 }
 0x5e5   :  { %789 = vadd.xlane.f32.xlu1 %v786_v3 }
 0x670   :  { %v788_v9 = vpop.xlane.xlu0 %787 }
 0x671   :  { %v791_v10 = vmul.f32 0.03125, %v788_v9 }
 0x672   :  { %v790_v11 = vpop.xlane.xlu1 %789 }
 0x673   :  { %v793_v12 = vadd.f32 1e-05, %v791_v10  ;;  %v792_v13 = vmul.f32 0.03125, %v790_v11 }
 0x675   :  { %1249 = vrsqrt.f32 %v793_v12  ;;  %v794_v14 = vadd.f32 1e-05, %v792_v13 }
 0x677   :  { %1251 = vrsqrt.f32 %v794_v14 }
 0x67f   :  { %v1250_v15 = vpop.eup %1249 }
 0x680   :  { %v797_v17 = vmul.f32 %v1250_v15, %v783_v50 }
 0x681   :  { %v1252_v18 = vpop.eup %1251 }
 0x682   :  { %v798_v19 = vmul.f32 %v1252_v18, %v784_v2  ;;  %v805_v20 = vmul.f32 %v997_v16, %v797_v17 }
 0x684   :  { %v806_v21 = vmul.f32 %v997_v16, %v798_v19  ;;  %v813_v22 = vadd.f32 %v998_v0, %v805_v20 }
 0x686   :  { %v814_v23 = vadd.f32 %v998_v0, %v806_v21 }
 0x688   :  { %v831_v24 = vpack.c.bf16 %v814_v23, %v813_v22 }
 0x68a   :  { %1179 = vmatmul.mubr.bf16.vlgmr.msra.gmra.mrb[8].mxu1 %v831_v24 }
 0x75d   :  { %v921_v26 = vpop.f32.mrb[8].mxu1 }
 0x75e   :  { %v922_v27 = vadd.f32 %v999_v25, %v921_v26  ;;  %v1180_v28 = vpop.f32.mrb[9].mxu1 }
 0x75f   :  { %v924_v29 = vpop.f32.mrb[10].mxu1 }
 0x760   :  { %928 = vst [vmem:[#allocation14] sm:$0xff] %v922_v27  ;;  %v925_v30 = vadd.f32 %v999_v25, %v924_v29  ;;  %v1181_v31 = vpop.f32.mrb[11].mxu1 }
 0x762   :  { %929 = vst [vmem:[#allocation14 + $0x8] sm:$0xff] %v925_v30 }
 0x763   :  { %1418 = shalt.err (!%p1415_p4)
}
 0x764   :  { %s1419_s30 = scalar_lea.hbm %s1808_s16, 256 }
 0x765   :  { %p1420_p5 = scmp.ne.s32.totalorder %s1808_s16, %s1419_s30  ;;  %p1423_p6 = scmp.lt.u32.totalorder %s1419_s30, %s1808_s16 }
 0x767   :  { %p1425_p7 = pnand %p1423_p6, %p1420_p5 }
 0x769   :  { %1428 = shalt.err (!%p1425_p7)
}
 0x76a   :  { %s1451_s10 = smov 128   ;;  %s1452_s1 = smov 8  }
 0x76b   :  { %941 = dma.vmem_to_hbm [thread:$0]  %s936_s21, 256, %s1808_s16, [#allocation4], %s1451_s10, %s1451_s10, %s1452_s1  }
 0x76c   :  { %1437 = dma.done.wait [#allocation4], 256  }
 0x76d   :  { %1438 = vsyncadd [#allocation4], 4294967040 }
 0x76e   :  { %945 = vsyncpa [#allocation3], 1 }
 0x76f   :  { %946 = vsyncpa [#allocation6], 1 }
 0x770   :  { %947 = vsyncpa [#allocation9], 1 }
 0x771   :  { %948 = vsyncpa [#allocation12], 1 }
 0x772   :  { %949 = vsyncpa [#allocation4], 1 }

</bundles_post_ra>
